<compile_context>
chip_gen: v5e
topology: v5e:2x2
jax: 0.10.0
libtpu: 0.0.40
codegen_flags: <defaults>
</compile_context>

<pallas_src>
import functools

import jax
import jax.numpy as jnp
from jax.experimental import pallas as pl
from jax.experimental.pallas import tpu as pltpu

NEG_SLOPE = 0.01     # F.leaky_relu default negative_slope
D_PAD = 128          # lane-pad every per-node feature dim to one full vreg width
N_LAYERS = 4


def _leaky(v):
    return jnp.where(v >= 0, v, NEG_SLOPE * v)


_VMEM = pl.BlockSpec(memory_space=pltpu.MemorySpace.VMEM)


# ------------------------------- fused kernel -------------------------------
# Per layer (concate=False, has_id=True), with Wc|Wl pre-concatenated:
#   cl    = x @ [Wc | Wl] + [bc | bl]
#   h     = leaky_relu( A @ cl[:, :D_PAD] )            # BasicGCN, aggr='add'
#   u_hat = leaky_relu( cl[:, D_PAD:] ) + id_emb
#   x     = leaky_relu( h @ Wg + bg + u_hat )
#
# TODO(synk): for a real (sparse, large) graph, replace the dense A @ xc with
# a CSR scalar-prefetch gather (PrefetchScalarGridSpec) and tile A over a
# (row_tile, k_tile) grid — a dense f32 A of N>=~2.8k no longer fits v7x's
# 64 MiB VMEM as a single block.  aggr='mean' would row-normalize A by
# in-degree in the wrapper.

def _gcn_fused_kernel(feat_ref, pref_ref, id_ref, adj_ref,
                      mlp_w_ref, mlp_b_ref,
                      wcl_ref, bcl_ref, wg_ref, bg_ref,
                      o_ref):
    # MLP(features); cat(preference, .); F.normalize(p=2, dim=1, eps=1e-12)
    temp = (jnp.dot(feat_ref[...], mlp_w_ref[...],
                    preferred_element_type=jnp.float32) + mlp_b_ref[...])
    x = jnp.concatenate([pref_ref[...], temp], axis=0)
    ssq = jnp.sum(x * x, axis=1, keepdims=True)
    # x / max(||x||, 1e-12) == x * rsqrt(max(||x||^2, 1e-24)); rsqrt -> EUP.
    x = x * jax.lax.rsqrt(jnp.maximum(ssq, 1e-24))

    adj = adj_ref[...]       # loaded once, reused by all 4 layers
    id_emb = id_ref[...]

    for layer in range(N_LAYERS):        # fixed trip count, trace-time unroll
        cl = (jnp.dot(x, wcl_ref[layer], preferred_element_type=jnp.float32)
              + bcl_ref[layer])
        xc = cl[:, :D_PAD]               # x @ Wc + bc   (lane-aligned slice)
        xl = cl[:, D_PAD:]               # x @ Wl + bl
        h = _leaky(jnp.dot(adj, xc, preferred_element_type=jnp.float32))
        u_hat = _leaky(xl) + id_emb
        g = (jnp.dot(h, wg_ref[layer], preferred_element_type=jnp.float32)
             + bg_ref[layer])
        x = _leaky(g + u_hat)

    o_ref[...] = x                       # single lane-dense store (N, 128)


def gcn_forward_pallas(packed, features, adj):
    """Single fused pallas_call over the whole forward; returns padded output."""
    n_nodes = adj.shape[0]
    return pl.pallas_call(
        _gcn_fused_kernel,
        out_shape=jax.ShapeDtypeStruct((n_nodes, D_PAD), jnp.float32),
        in_specs=[_VMEM] * 10,
        out_specs=_VMEM,
    )(features, packed["preference"], packed["id_embedding"], adj,
      packed["mlp_w"], packed["mlp_b"],
      packed["wcl"], packed["bcl"], packed["wg"], packed["bg"])


# ----------------------------- parameter setup ------------------------------

def xavier_normal(key, out_dim, in_dim):
    std = (2.0 / (in_dim + out_dim)) ** 0.5
    return std * jax.random.normal(key, (out_dim, in_dim), dtype=jnp.float32)


def linear_params(key, in_dim, out_dim):
    """nn.Linear: xavier-normal weight (out,in), default-style uniform bias.
    Returned weight is pre-transposed to (in,out) for the kernel."""
    kw, kb = jax.random.split(key)
    w = xavier_normal(kw, out_dim, in_dim)
    bound = 1.0 / (in_dim ** 0.5)
    b = jax.random.uniform(kb, (1, out_dim), minval=-bound, maxval=bound,
                           dtype=jnp.float32)
    return w.T, b


def make_gcn_params(key, num_user, dim_feat, dim_latent, dim_id):
    keys = jax.random.split(key, 16)
    params = {
        "preference": xavier_normal(keys[0], num_user, dim_latent),
        "mlp": linear_params(keys[1], dim_feat, dim_latent),
        "conv1": linear_params(keys[2], dim_latent, dim_latent),
        "lin1": linear_params(keys[3], dim_latent, dim_id),
        "g1": linear_params(keys[4], dim_latent, dim_id),
    }
    k = 5
    for layer in (2, 3, 4):
        params[f"conv{layer}"] = linear_params(keys[k], dim_id, dim_id); k += 1
        params[f"lin{layer}"] = linear_params(keys[k], dim_id, dim_id); k += 1
        params[f"g{layer}"] = linear_params(keys[k], dim_id, dim_id); k += 1
    return params


def _pad2(a, rows, cols):
    return jnp.zeros((rows, cols), a.dtype).at[:a.shape[0], :a.shape[1]].set(a)


def pack_params(params, id_embedding, dim_feat):
    """Zero-pad feature dims to D_PAD lanes, fuse [Wc|Wl], stack the 4 layers."""
    wm, bm = params["mlp"]
    packed = {
        "mlp_w": _pad2(wm, dim_feat, D_PAD),
        "mlp_b": _pad2(bm, 1, D_PAD),
        "preference": _pad2(params["preference"],
                            params["preference"].shape[0], D_PAD),
        "id_embedding": _pad2(id_embedding, id_embedding.shape[0], D_PAD),
    }
    wcl, bcl, wg, bg = [], [], [], []
    for layer in (1, 2, 3, 4):
        wc, bc = params[f"conv{layer}"]
        wl, bl = params[f"lin{layer}"]
        wgl, bgl = params[f"g{layer}"]
        w = jnp.zeros((D_PAD, 2 * D_PAD), jnp.float32)
        w = w.at[:wc.shape[0], :wc.shape[1]].set(wc)
        w = w.at[:wl.shape[0], D_PAD:D_PAD + wl.shape[1]].set(wl)
        b = jnp.zeros((1, 2 * D_PAD), jnp.float32)
        b = b.at[:, :bc.shape[1]].set(bc)
        b = b.at[:, D_PAD:D_PAD + bl.shape[1]].set(bl)
        wcl.append(w); bcl.append(b)
        wg.append(_pad2(wgl, D_PAD, D_PAD))
        bg.append(_pad2(bgl, 1, D_PAD))
    packed["wcl"] = jnp.stack(wcl)    # (4, D_PAD, 2*D_PAD)
    packed["bcl"] = jnp.stack(bcl)    # (4, 1, 2*D_PAD)
    packed["wg"] = jnp.stack(wg)      # (4, D_PAD, D_PAD)
    packed["bg"] = jnp.stack(bg)      # (4, 1, D_PAD)
    return packed


# ----------------------------- pure-jnp reference ---------------------------

def gcn_forward_ref(params, features, id_embedding, adj):
    wm, bm = params["mlp"]
    temp = features @ wm + bm
    x = jnp.concatenate([params["preference"], temp], axis=0)
    x = x / jnp.maximum(jnp.sqrt(jnp.sum(x * x, axis=1, keepdims=True)), 1e-12)
    for layer in (1, 2, 3, 4):
        wc, bc = params[f"conv{layer}"]
        wl, bl = params[f"lin{layer}"]
        wg, bg = params[f"g{layer}"]
        h = _leaky(adj @ (x @ wc + bc))
        u_hat = _leaky(x @ wl + bl) + id_embedding
        x = _leaky((h @ wg + bg) + u_hat)
    return x


# --------------------------------- driver -----------------------------------

if __name__ == "__main__":
    num_user, num_item = 8, 8
    dim_feat, dim_latent, dim_id = 32, 16, 16
    n_nodes = num_user + num_item

    root = jax.random.PRNGKey(0)
    k_feat, k_id, k_edge, k_params = jax.random.split(root, 4)

    # item content features and id embedding for all nodes
    features = jax.random.normal(k_feat, (num_item, dim_feat), dtype=jnp.float32)
    id_embedding = jax.random.normal(k_id, (n_nodes, dim_id), dtype=jnp.float32)

    # synthetic bipartite interaction graph, both directions (MMGCN convention)
    n_inter = 24
    users = jax.random.randint(k_edge, (n_inter,), 0, num_user)
    items = jax.random.randint(jax.random.fold_in(k_edge, 1), (n_inter,),
                               0, num_item) + num_user
    src = jnp.concatenate([users, items])
    dst = jnp.concatenate([items, users])
    # dense adjacency for aggr='add': out[dst] += msg[src]  =>  A[dst, src] += 1
    adj = jnp.zeros((n_nodes, n_nodes), dtype=jnp.float32).at[dst, src].add(1.0)

    params = make_gcn_params(k_params, num_user, dim_feat, dim_latent, dim_id)
    packed = pack_params(params, id_embedding, dim_feat)

    fwd = jax.jit(lambda pk, f, a: gcn_forward_pallas(pk, f, a)[:, :dim_id])
    out = jax.block_until_ready(fwd(packed, features, adj))

    ref = gcn_forward_ref(params, features, id_embedding, adj)
    assert out.shape == (n_nodes, dim_id)
    assert jnp.allclose(out, ref, rtol=1e-4, atol=1e-4), "mismatch vs reference"

    print("KERNEL_OK")
</pallas_src>

<mosaic_0001>
module attributes {stable_mosaic.version = 11 : i64} {
  func.func @_gcn_fused_kernel(%arg0: memref<8x32xf32, #tpu.memory_space<vmem>>, %arg1: memref<8x128xf32, #tpu.memory_space<vmem>>, %arg2: memref<16x128xf32, #tpu.memory_space<vmem>>, %arg3: memref<16x16xf32, #tpu.memory_space<vmem>>, %arg4: memref<32x128xf32, #tpu.memory_space<vmem>>, %arg5: memref<1x128xf32, #tpu.memory_space<vmem>>, %arg6: memref<4x128x256xf32, #tpu.memory_space<vmem>>, %arg7: memref<4x1x256xf32, #tpu.memory_space<vmem>>, %arg8: memref<4x128x128xf32, #tpu.memory_space<vmem>>, %arg9: memref<4x1x128xf32, #tpu.memory_space<vmem>>, %arg10: memref<16x128xf32, #tpu.memory_space<vmem>>) attributes {dimension_semantics = [], scalar_prefetch = 0 : i64, scratch_operands = 0 : i64, tpu.core_type = #tpu.core_type<tc>} {
    %c0 = arith.constant 0 : index
    %c0_0 = arith.constant 0 : index
    %0 = vector.load %arg0[%c0, %c0_0] : memref<8x32xf32, #tpu.memory_space<vmem>>, vector<8x32xf32>
    %c0_1 = arith.constant 0 : index
    %c0_2 = arith.constant 0 : index
    %1 = vector.load %arg4[%c0_1, %c0_2] : memref<32x128xf32, #tpu.memory_space<vmem>>, vector<32x128xf32>
    %cst = arith.constant dense<0.000000e+00> : vector<8x128xf32>
    %2 = tpu.matmul %0, %1, %cst {dimension_numbers = #tpu.dot_dimension_numbers<[1], [0], [0], [1], [0, 0, 1, 1], [], []>} : vector<8x32xf32>, vector<32x128xf32>, vector<8x128xf32> -> vector<8x128xf32>
    %c0_3 = arith.constant 0 : index
    %c0_4 = arith.constant 0 : index
    %3 = vector.load %arg5[%c0_3, %c0_4] : memref<1x128xf32, #tpu.memory_space<vmem>>, vector<1x128xf32>
    %4 = vector.broadcast %3 : vector<1x128xf32> to vector<8x128xf32>
    %5 = arith.addf %2, %4 : vector<8x128xf32>
    %c0_5 = arith.constant 0 : index
    %c0_6 = arith.constant 0 : index
    %6 = vector.load %arg1[%c0_5, %c0_6] : memref<8x128xf32, #tpu.memory_space<vmem>>, vector<8x128xf32>
    %7 = tpu.concatenate %6, %5 in 0 : vector<8x128xf32>, vector<8x128xf32> -> vector<16x128xf32>
    %8 = arith.mulf %7, %7 : vector<16x128xf32>
    %cst_7 = arith.constant dense<0.000000e+00> : vector<16xf32>
    %9 = vector.multi_reduction <add>, %8, %cst_7 [1] : vector<16x128xf32> to vector<16xf32>
    %10 = vector.shape_cast %9 : vector<16xf32> to vector<16x1xf32>
    %cst_8 = arith.constant 1.000000e-24 : f32
    %11 = vector.broadcast %cst_8 : f32 to vector<16x1xf32>
    %12 = arith.maximumf %10, %11 : vector<16x1xf32>
    %13 = math.rsqrt %12 : vector<16x1xf32>
    %14 = vector.broadcast %13 : vector<16x1xf32> to vector<16x128xf32>
    %15 = arith.mulf %7, %14 : vector<16x128xf32>
    %c0_9 = arith.constant 0 : index
    %c0_10 = arith.constant 0 : index
    %16 = vector.load %arg3[%c0_9, %c0_10] : memref<16x16xf32, #tpu.memory_space<vmem>>, vector<16x16xf32>
    %c0_11 = arith.constant 0 : index
    %c0_12 = arith.constant 0 : index
    %17 = vector.load %arg2[%c0_11, %c0_12] : memref<16x128xf32, #tpu.memory_space<vmem>>, vector<16x128xf32>
    %c0_13 = arith.constant 0 : index
    %c0_14 = arith.constant 0 : index
    %c0_15 = arith.constant 0 : index
    %18 = vector.load %arg6[%c0_13, %c0_14, %c0_15] : memref<4x128x256xf32, #tpu.memory_space<vmem>>, vector<1x128x256xf32>
    %19 = vector.shape_cast %18 : vector<1x128x256xf32> to vector<128x256xf32>
    %cst_16 = arith.constant dense<0.000000e+00> : vector<16x256xf32>
    %20 = tpu.matmul %15, %19, %cst_16 {dimension_numbers = #tpu.dot_dimension_numbers<[1], [0], [0], [1], [0, 0, 1, 1], [], []>} : vector<16x128xf32>, vector<128x256xf32>, vector<16x256xf32> -> vector<16x256xf32>
    %c0_17 = arith.constant 0 : index
    %c0_18 = arith.constant 0 : index
    %c0_19 = arith.constant 0 : index
    %21 = vector.load %arg7[%c0_17, %c0_18, %c0_19] : memref<4x1x256xf32, #tpu.memory_space<vmem>>, vector<1x1x256xf32>
    %22 = vector.shape_cast %21 : vector<1x1x256xf32> to vector<1x256xf32>
    %23 = vector.broadcast %22 : vector<1x256xf32> to vector<16x256xf32>
    %24 = arith.addf %20, %23 : vector<16x256xf32>
    %25 = vector.extract_strided_slice %24 {offsets = [0, 0], sizes = [16, 128], strides = [1, 1]} : vector<16x256xf32> to vector<16x128xf32>
    %26 = vector.extract_strided_slice %24 {offsets = [0, 128], sizes = [16, 128], strides = [1, 1]} : vector<16x256xf32> to vector<16x128xf32>
    %cst_20 = arith.constant dense<0.000000e+00> : vector<16x128xf32>
    %27 = tpu.matmul %16, %25, %cst_20 {dimension_numbers = #tpu.dot_dimension_numbers<[1], [0], [0], [1], [0, 0, 1, 1], [], []>} : vector<16x16xf32>, vector<16x128xf32>, vector<16x128xf32> -> vector<16x128xf32>
    %cst_21 = arith.constant 0.000000e+00 : f32
    %28 = vector.broadcast %cst_21 : f32 to vector<16x128xf32>
    %29 = arith.cmpf oge, %27, %28 : vector<16x128xf32>
    %cst_22 = arith.constant 0.00999999977 : f32
    %30 = vector.broadcast %cst_22 : f32 to vector<16x128xf32>
    %31 = arith.mulf %30, %27 : vector<16x128xf32>
    %32 = arith.select %29, %27, %31 : vector<16x128xi1>, vector<16x128xf32>
    %cst_23 = arith.constant 0.000000e+00 : f32
    %33 = vector.broadcast %cst_23 : f32 to vector<16x128xf32>
    %34 = arith.cmpf oge, %26, %33 : vector<16x128xf32>
    %cst_24 = arith.constant 0.00999999977 : f32
    %35 = vector.broadcast %cst_24 : f32 to vector<16x128xf32>
    %36 = arith.mulf %35, %26 : vector<16x128xf32>
    %37 = arith.select %34, %26, %36 : vector<16x128xi1>, vector<16x128xf32>
    %38 = arith.addf %37, %17 : vector<16x128xf32>
    %c0_25 = arith.constant 0 : index
    %c0_26 = arith.constant 0 : index
    %c0_27 = arith.constant 0 : index
    %39 = vector.load %arg8[%c0_25, %c0_26, %c0_27] : memref<4x128x128xf32, #tpu.memory_space<vmem>>, vector<1x128x128xf32>
    %40 = vector.shape_cast %39 : vector<1x128x128xf32> to vector<128x128xf32>
    %cst_28 = arith.constant dense<0.000000e+00> : vector<16x128xf32>
    %41 = tpu.matmul %32, %40, %cst_28 {dimension_numbers = #tpu.dot_dimension_numbers<[1], [0], [0], [1], [0, 0, 1, 1], [], []>} : vector<16x128xf32>, vector<128x128xf32>, vector<16x128xf32> -> vector<16x128xf32>
    %c0_29 = arith.constant 0 : index
    %c0_30 = arith.constant 0 : index
    %c0_31 = arith.constant 0 : index
    %42 = vector.load %arg9[%c0_29, %c0_30, %c0_31] : memref<4x1x128xf32, #tpu.memory_space<vmem>>, vector<1x1x128xf32>
    %43 = vector.shape_cast %42 : vector<1x1x128xf32> to vector<1x128xf32>
    %44 = vector.broadcast %43 : vector<1x128xf32> to vector<16x128xf32>
    %45 = arith.addf %41, %44 : vector<16x128xf32>
    %46 = arith.addf %45, %38 : vector<16x128xf32>
    %cst_32 = arith.constant 0.000000e+00 : f32
    %47 = vector.broadcast %cst_32 : f32 to vector<16x128xf32>
    %48 = arith.cmpf oge, %46, %47 : vector<16x128xf32>
    %cst_33 = arith.constant 0.00999999977 : f32
    %49 = vector.broadcast %cst_33 : f32 to vector<16x128xf32>
    %50 = arith.mulf %49, %46 : vector<16x128xf32>
    %51 = arith.select %48, %46, %50 : vector<16x128xi1>, vector<16x128xf32>
    %c1 = arith.constant 1 : index
    %c0_34 = arith.constant 0 : index
    %c0_35 = arith.constant 0 : index
    %52 = vector.load %arg6[%c1, %c0_34, %c0_35] : memref<4x128x256xf32, #tpu.memory_space<vmem>>, vector<1x128x256xf32>
    %53 = vector.shape_cast %52 : vector<1x128x256xf32> to vector<128x256xf32>
    %cst_36 = arith.constant dense<0.000000e+00> : vector<16x256xf32>
    %54 = tpu.matmul %51, %53, %cst_36 {dimension_numbers = #tpu.dot_dimension_numbers<[1], [0], [0], [1], [0, 0, 1, 1], [], []>} : vector<16x128xf32>, vector<128x256xf32>, vector<16x256xf32> -> vector<16x256xf32>
    %c1_37 = arith.constant 1 : index
    %c0_38 = arith.constant 0 : index
    %c0_39 = arith.constant 0 : index
    %55 = vector.load %arg7[%c1_37, %c0_38, %c0_39] : memref<4x1x256xf32, #tpu.memory_space<vmem>>, vector<1x1x256xf32>
    %56 = vector.shape_cast %55 : vector<1x1x256xf32> to vector<1x256xf32>
    %57 = vector.broadcast %56 : vector<1x256xf32> to vector<16x256xf32>
    %58 = arith.addf %54, %57 : vector<16x256xf32>
    %59 = vector.extract_strided_slice %58 {offsets = [0, 0], sizes = [16, 128], strides = [1, 1]} : vector<16x256xf32> to vector<16x128xf32>
    %60 = vector.extract_strided_slice %58 {offsets = [0, 128], sizes = [16, 128], strides = [1, 1]} : vector<16x256xf32> to vector<16x128xf32>
    %cst_40 = arith.constant dense<0.000000e+00> : vector<16x128xf32>
    %61 = tpu.matmul %16, %59, %cst_40 {dimension_numbers = #tpu.dot_dimension_numbers<[1], [0], [0], [1], [0, 0, 1, 1], [], []>} : vector<16x16xf32>, vector<16x128xf32>, vector<16x128xf32> -> vector<16x128xf32>
    %cst_41 = arith.constant 0.000000e+00 : f32
    %62 = vector.broadcast %cst_41 : f32 to vector<16x128xf32>
    %63 = arith.cmpf oge, %61, %62 : vector<16x128xf32>
    %cst_42 = arith.constant 0.00999999977 : f32
    %64 = vector.broadcast %cst_42 : f32 to vector<16x128xf32>
    %65 = arith.mulf %64, %61 : vector<16x128xf32>
    %66 = arith.select %63, %61, %65 : vector<16x128xi1>, vector<16x128xf32>
    %cst_43 = arith.constant 0.000000e+00 : f32
    %67 = vector.broadcast %cst_43 : f32 to vector<16x128xf32>
    %68 = arith.cmpf oge, %60, %67 : vector<16x128xf32>
    %cst_44 = arith.constant 0.00999999977 : f32
    %69 = vector.broadcast %cst_44 : f32 to vector<16x128xf32>
    %70 = arith.mulf %69, %60 : vector<16x128xf32>
    %71 = arith.select %68, %60, %70 : vector<16x128xi1>, vector<16x128xf32>
    %72 = arith.addf %71, %17 : vector<16x128xf32>
    %c1_45 = arith.constant 1 : index
    %c0_46 = arith.constant 0 : index
    %c0_47 = arith.constant 0 : index
    %73 = vector.load %arg8[%c1_45, %c0_46, %c0_47] : memref<4x128x128xf32, #tpu.memory_space<vmem>>, vector<1x128x128xf32>
    %74 = vector.shape_cast %73 : vector<1x128x128xf32> to vector<128x128xf32>
    %cst_48 = arith.constant dense<0.000000e+00> : vector<16x128xf32>
    %75 = tpu.matmul %66, %74, %cst_48 {dimension_numbers = #tpu.dot_dimension_numbers<[1], [0], [0], [1], [0, 0, 1, 1], [], []>} : vector<16x128xf32>, vector<128x128xf32>, vector<16x128xf32> -> vector<16x128xf32>
    %c1_49 = arith.constant 1 : index
    %c0_50 = arith.constant 0 : index
    %c0_51 = arith.constant 0 : index
    %76 = vector.load %arg9[%c1_49, %c0_50, %c0_51] : memref<4x1x128xf32, #tpu.memory_space<vmem>>, vector<1x1x128xf32>
    %77 = vector.shape_cast %76 : vector<1x1x128xf32> to vector<1x128xf32>
    %78 = vector.broadcast %77 : vector<1x128xf32> to vector<16x128xf32>
    %79 = arith.addf %75, %78 : vector<16x128xf32>
    %80 = arith.addf %79, %72 : vector<16x128xf32>
    %cst_52 = arith.constant 0.000000e+00 : f32
    %81 = vector.broadcast %cst_52 : f32 to vector<16x128xf32>
    %82 = arith.cmpf oge, %80, %81 : vector<16x128xf32>
    %cst_53 = arith.constant 0.00999999977 : f32
    %83 = vector.broadcast %cst_53 : f32 to vector<16x128xf32>
    %84 = arith.mulf %83, %80 : vector<16x128xf32>
    %85 = arith.select %82, %80, %84 : vector<16x128xi1>, vector<16x128xf32>
    %c2 = arith.constant 2 : index
    %c0_54 = arith.constant 0 : index
    %c0_55 = arith.constant 0 : index
    %86 = vector.load %arg6[%c2, %c0_54, %c0_55] : memref<4x128x256xf32, #tpu.memory_space<vmem>>, vector<1x128x256xf32>
    %87 = vector.shape_cast %86 : vector<1x128x256xf32> to vector<128x256xf32>
    %cst_56 = arith.constant dense<0.000000e+00> : vector<16x256xf32>
    %88 = tpu.matmul %85, %87, %cst_56 {dimension_numbers = #tpu.dot_dimension_numbers<[1], [0], [0], [1], [0, 0, 1, 1], [], []>} : vector<16x128xf32>, vector<128x256xf32>, vector<16x256xf32> -> vector<16x256xf32>
    %c2_57 = arith.constant 2 : index
    %c0_58 = arith.constant 0 : index
    %c0_59 = arith.constant 0 : index
    %89 = vector.load %arg7[%c2_57, %c0_58, %c0_59] : memref<4x1x256xf32, #tpu.memory_space<vmem>>, vector<1x1x256xf32>
    %90 = vector.shape_cast %89 : vector<1x1x256xf32> to vector<1x256xf32>
    %91 = vector.broadcast %90 : vector<1x256xf32> to vector<16x256xf32>
    %92 = arith.addf %88, %91 : vector<16x256xf32>
    %93 = vector.extract_strided_slice %92 {offsets = [0, 0], sizes = [16, 128], strides = [1, 1]} : vector<16x256xf32> to vector<16x128xf32>
    %94 = vector.extract_strided_slice %92 {offsets = [0, 128], sizes = [16, 128], strides = [1, 1]} : vector<16x256xf32> to vector<16x128xf32>
    %cst_60 = arith.constant dense<0.000000e+00> : vector<16x128xf32>
    %95 = tpu.matmul %16, %93, %cst_60 {dimension_numbers = #tpu.dot_dimension_numbers<[1], [0], [0], [1], [0, 0, 1, 1], [], []>} : vector<16x16xf32>, vector<16x128xf32>, vector<16x128xf32> -> vector<16x128xf32>
    %cst_61 = arith.constant 0.000000e+00 : f32
    %96 = vector.broadcast %cst_61 : f32 to vector<16x128xf32>
    %97 = arith.cmpf oge, %95, %96 : vector<16x128xf32>
    %cst_62 = arith.constant 0.00999999977 : f32
    %98 = vector.broadcast %cst_62 : f32 to vector<16x128xf32>
    %99 = arith.mulf %98, %95 : vector<16x128xf32>
    %100 = arith.select %97, %95, %99 : vector<16x128xi1>, vector<16x128xf32>
    %cst_63 = arith.constant 0.000000e+00 : f32
    %101 = vector.broadcast %cst_63 : f32 to vector<16x128xf32>
    %102 = arith.cmpf oge, %94, %101 : vector<16x128xf32>
    %cst_64 = arith.constant 0.00999999977 : f32
    %103 = vector.broadcast %cst_64 : f32 to vector<16x128xf32>
    %104 = arith.mulf %103, %94 : vector<16x128xf32>
    %105 = arith.select %102, %94, %104 : vector<16x128xi1>, vector<16x128xf32>
    %106 = arith.addf %105, %17 : vector<16x128xf32>
    %c2_65 = arith.constant 2 : index
    %c0_66 = arith.constant 0 : index
    %c0_67 = arith.constant 0 : index
    %107 = vector.load %arg8[%c2_65, %c0_66, %c0_67] : memref<4x128x128xf32, #tpu.memory_space<vmem>>, vector<1x128x128xf32>
    %108 = vector.shape_cast %107 : vector<1x128x128xf32> to vector<128x128xf32>
    %cst_68 = arith.constant dense<0.000000e+00> : vector<16x128xf32>
    %109 = tpu.matmul %100, %108, %cst_68 {dimension_numbers = #tpu.dot_dimension_numbers<[1], [0], [0], [1], [0, 0, 1, 1], [], []>} : vector<16x128xf32>, vector<128x128xf32>, vector<16x128xf32> -> vector<16x128xf32>
    %c2_69 = arith.constant 2 : index
    %c0_70 = arith.constant 0 : index
    %c0_71 = arith.constant 0 : index
    %110 = vector.load %arg9[%c2_69, %c0_70, %c0_71] : memref<4x1x128xf32, #tpu.memory_space<vmem>>, vector<1x1x128xf32>
    %111 = vector.shape_cast %110 : vector<1x1x128xf32> to vector<1x128xf32>
    %112 = vector.broadcast %111 : vector<1x128xf32> to vector<16x128xf32>
    %113 = arith.addf %109, %112 : vector<16x128xf32>
    %114 = arith.addf %113, %106 : vector<16x128xf32>
    %cst_72 = arith.constant 0.000000e+00 : f32
    %115 = vector.broadcast %cst_72 : f32 to vector<16x128xf32>
    %116 = arith.cmpf oge, %114, %115 : vector<16x128xf32>
    %cst_73 = arith.constant 0.00999999977 : f32
    %117 = vector.broadcast %cst_73 : f32 to vector<16x128xf32>
    %118 = arith.mulf %117, %114 : vector<16x128xf32>
    %119 = arith.select %116, %114, %118 : vector<16x128xi1>, vector<16x128xf32>
    %c3 = arith.constant 3 : index
    %c0_74 = arith.constant 0 : index
    %c0_75 = arith.constant 0 : index
    %120 = vector.load %arg6[%c3, %c0_74, %c0_75] : memref<4x128x256xf32, #tpu.memory_space<vmem>>, vector<1x128x256xf32>
    %121 = vector.shape_cast %120 : vector<1x128x256xf32> to vector<128x256xf32>
    %cst_76 = arith.constant dense<0.000000e+00> : vector<16x256xf32>
    %122 = tpu.matmul %119, %121, %cst_76 {dimension_numbers = #tpu.dot_dimension_numbers<[1], [0], [0], [1], [0, 0, 1, 1], [], []>} : vector<16x128xf32>, vector<128x256xf32>, vector<16x256xf32> -> vector<16x256xf32>
    %c3_77 = arith.constant 3 : index
    %c0_78 = arith.constant 0 : index
    %c0_79 = arith.constant 0 : index
    %123 = vector.load %arg7[%c3_77, %c0_78, %c0_79] : memref<4x1x256xf32, #tpu.memory_space<vmem>>, vector<1x1x256xf32>
    %124 = vector.shape_cast %123 : vector<1x1x256xf32> to vector<1x256xf32>
    %125 = vector.broadcast %124 : vector<1x256xf32> to vector<16x256xf32>
    %126 = arith.addf %122, %125 : vector<16x256xf32>
    %127 = vector.extract_strided_slice %126 {offsets = [0, 0], sizes = [16, 128], strides = [1, 1]} : vector<16x256xf32> to vector<16x128xf32>
    %128 = vector.extract_strided_slice %126 {offsets = [0, 128], sizes = [16, 128], strides = [1, 1]} : vector<16x256xf32> to vector<16x128xf32>
    %cst_80 = arith.constant dense<0.000000e+00> : vector<16x128xf32>
    %129 = tpu.matmul %16, %127, %cst_80 {dimension_numbers = #tpu.dot_dimension_numbers<[1], [0], [0], [1], [0, 0, 1, 1], [], []>} : vector<16x16xf32>, vector<16x128xf32>, vector<16x128xf32> -> vector<16x128xf32>
    %cst_81 = arith.constant 0.000000e+00 : f32
    %130 = vector.broadcast %cst_81 : f32 to vector<16x128xf32>
    %131 = arith.cmpf oge, %129, %130 : vector<16x128xf32>
    %cst_82 = arith.constant 0.00999999977 : f32
    %132 = vector.broadcast %cst_82 : f32 to vector<16x128xf32>
    %133 = arith.mulf %132, %129 : vector<16x128xf32>
    %134 = arith.select %131, %129, %133 : vector<16x128xi1>, vector<16x128xf32>
    %cst_83 = arith.constant 0.000000e+00 : f32
    %135 = vector.broadcast %cst_83 : f32 to vector<16x128xf32>
    %136 = arith.cmpf oge, %128, %135 : vector<16x128xf32>
    %cst_84 = arith.constant 0.00999999977 : f32
    %137 = vector.broadcast %cst_84 : f32 to vector<16x128xf32>
    %138 = arith.mulf %137, %128 : vector<16x128xf32>
    %139 = arith.select %136, %128, %138 : vector<16x128xi1>, vector<16x128xf32>
    %140 = arith.addf %139, %17 : vector<16x128xf32>
    %c3_85 = arith.constant 3 : index
    %c0_86 = arith.constant 0 : index
    %c0_87 = arith.constant 0 : index
    %141 = vector.load %arg8[%c3_85, %c0_86, %c0_87] : memref<4x128x128xf32, #tpu.memory_space<vmem>>, vector<1x128x128xf32>
    %142 = vector.shape_cast %141 : vector<1x128x128xf32> to vector<128x128xf32>
    %cst_88 = arith.constant dense<0.000000e+00> : vector<16x128xf32>
    %143 = tpu.matmul %134, %142, %cst_88 {dimension_numbers = #tpu.dot_dimension_numbers<[1], [0], [0], [1], [0, 0, 1, 1], [], []>} : vector<16x128xf32>, vector<128x128xf32>, vector<16x128xf32> -> vector<16x128xf32>
    %c3_89 = arith.constant 3 : index
    %c0_90 = arith.constant 0 : index
    %c0_91 = arith.constant 0 : index
    %144 = vector.load %arg9[%c3_89, %c0_90, %c0_91] : memref<4x1x128xf32, #tpu.memory_space<vmem>>, vector<1x1x128xf32>
    %145 = vector.shape_cast %144 : vector<1x1x128xf32> to vector<1x128xf32>
    %146 = vector.broadcast %145 : vector<1x128xf32> to vector<16x128xf32>
    %147 = arith.addf %143, %146 : vector<16x128xf32>
    %148 = arith.addf %147, %140 : vector<16x128xf32>
    %cst_92 = arith.constant 0.000000e+00 : f32
    %149 = vector.broadcast %cst_92 : f32 to vector<16x128xf32>
    %150 = arith.cmpf oge, %148, %149 : vector<16x128xf32>
    %cst_93 = arith.constant 0.00999999977 : f32
    %151 = vector.broadcast %cst_93 : f32 to vector<16x128xf32>
    %152 = arith.mulf %151, %148 : vector<16x128xf32>
    %153 = arith.select %150, %148, %152 : vector<16x128xi1>, vector<16x128xf32>
    %c0_94 = arith.constant 0 : index
    %c0_95 = arith.constant 0 : index
    %154 = vector.load %arg10[%c0_94, %c0_95] : memref<16x128xf32, #tpu.memory_space<vmem>>, vector<16x128xf32>
    tpu.vector_store %arg10[%c0_94, %c0_95], %153 {strides = array<i32>} : memref<16x128xf32, #tpu.memory_space<vmem>>, vector<16x128xf32>,
    return
  }
}

</mosaic_0001>

<bundles_post_ra>
// kernel: _lambda_.1
= control target key start
LH: loop header
LB: loop body
LE: loop exit
PB: predicated region body
PF: predicated region fallthrough
CT: control target
= control target key end

     0   :  { %15 = vsyncpa [#allocation3], 0  ;;  %s1431_s0 = inlined_call_operand.hbm [shape: f32[8,32], index: 0, kind: input, shape index: {}]   ;;  %s1432_s1 = inlined_call_operand.hbm [shape: f32[8,128], index: 1, kind: input, shape index: {}]   ;;  %s1433_s2 = inlined_call_operand.hbm [shape: f32[16,128], index: 2, kind: input, shape index: {}]   ;;  %s1434_s3 = inlined_call_operand.hbm [shape: f32[16,16], index: 3, kind: input, shape index: {}]   ;;  %s1435_s4 = inlined_call_operand.hbm [shape: f32[32,128], index: 4, kind: input, shape index: {}]   ;;  %s1436_s5 = inlined_call_operand.vmem [shape: f32[1,128], index: 5, kind: input, shape index: {}]   ;;  %s1437_s6 = inlined_call_operand.hbm [shape: f32[4,128,256], index: 6, kind: input, shape index: {}]   ;;  %s1438_s7 = inlined_call_operand.hbm [shape: f32[4,1,256], index: 7, kind: input, shape index: {}]   ;;  %s1439_s8 = inlined_call_operand.hbm [shape: f32[4,128,128], index: 8, kind: input, shape index: {}]   ;;  %s1440_s9 = inlined_call_operand.hbm [shape: f32[4,1,128], index: 9, kind: input, shape index: {}]   ;;  %s1441_s10 = inlined_call_operand.hbm [shape: f32[16,128], index: 10, kind: output, shape index: {}]  }
   0x1   :  { %16 = vsyncpa [#allocation6], 0 }
   0x2   :  { %17 = vsyncpa [#allocation9], 0 }
   0x3   :  { %18 = vsyncpa [#allocation12], 0 }
   0x4   :  { %19 = vsyncpa [#allocation15], 0  ;;  %s37_s15 = sshll.u32 %s1432_s1, 4  ;;  %s38_s15 = int_to_ptr.hbm [resolvable:$true] %s37_s15 }
   0x5   :  { %20 = vsyncpa [#allocation4], 0  ;;  %s1259_s16 = smov [#allocation5]   ;;  %s60_s20 = sshll.u32 %s1434_s3, 4  ;;  %s61_s20 = int_to_ptr.hbm [resolvable:$true] %s60_s20 }
   0x6   :  { %s39_s17 = sshll.u32 %s1259_s16, 4  ;;  %s1260_s21 = smov [#allocation8]   ;;  %s40_s17 = int_to_ptr.vmem [resolvable:$true] %s39_s17 }
   0x7   :  { %42 = dma.hbm_to_vmem [thread:$0]  %s38_s15, 128, %s40_s17, [#allocation6]  }
   0x8   :  { %s62_s22 = sshll.u32 %s1260_s21, 4  ;;  %s88_s25 = sshll.u32 %s1437_s6, 4  ;;  %s63_s22 = int_to_ptr.vmem [resolvable:$true] %s62_s22  ;;  %s89_s25 = int_to_ptr.hbm [resolvable:$true] %s88_s25 }
   0x9   :  { %s1261_s1 = smov 128   ;;  %s1262_s26 = smov 8  }
   0xa   :  { %68 = dma.hbm_to_vmem [thread:$0]  %s61_s20, 256, %s63_s22, [#allocation9], %s1261_s1, %s1261_s1, %s1262_s26  }
   0xb   :  { %s1263_s27 = smov [#allocation11]   ;;  %s114_s30 = sshll.u32 %s1439_s8, 4  ;;  %s115_s30 = int_to_ptr.hbm [resolvable:$true] %s114_s30 }
   0xc   :  { %s90_s28 = sshll.u32 %s1263_s27, 4  ;;  %s1264_s11 = smov 256   ;;  %s91_s28 = int_to_ptr.vmem [resolvable:$true] %s90_s28 }
   0xd   :  { %s1265_s12 = smov 16   ;;  %s1266_s6 = smov [#allocation14]  }
   0xe   :  { %96 = dma.hbm_to_vmem [thread:$0]  %s89_s25, 16384, %s91_s28, [#allocation12], %s1264_s11, %s1264_s11, %s1265_s12  }
   0xf   :  { %s116_s13 = sshll.u32 %s1266_s6, 4  ;;  %s26_s16 = sshll.u32 %s1431_s0, 4  ;;  %s117_s13 = int_to_ptr.vmem [resolvable:$true] %s116_s13  ;;  %s27_s16 = int_to_ptr.hbm [resolvable:$true] %s26_s16 }
  0x10   :  { %122 = dma.hbm_to_vmem [thread:$0]  %s115_s30, 8192, %s117_s13, [#allocation15], %s1261_s1, %s1261_s1, %s1262_s26  }
  0x11   :  { %s47_s8 = sshll.u32 %s1433_s2, 4  ;;  %s1267_s19 = smov [#allocation2]   ;;  %s48_s8 = int_to_ptr.hbm [resolvable:$true] %s47_s8 }
  0x12   :  { %s28_s20 = sshll.u32 %s1267_s19, 4  ;;  %s1268_s21 = smov [#allocation7]   ;;  %s29_s20 = int_to_ptr.vmem [resolvable:$true] %s28_s20 }
  0x13   :  { %31 = dma.hbm_to_vmem [thread:$0]  %s27_s16, 128, %s29_s20, [#allocation3]  }
  0x14   :  { %s49_s22 = sshll.u32 %s1268_s21, 4  ;;  %s73_s0 = sshll.u32 %s1435_s4, 4  ;;  %s50_s22 = int_to_ptr.vmem [resolvable:$true] %s49_s22  ;;  %s74_s0 = int_to_ptr.hbm [resolvable:$true] %s73_s0 }
  0x15   :  { %55 = dma.hbm_to_vmem [thread:$0]  %s48_s8, 256, %s50_s22, [#allocation6], %s1261_s1, %s1261_s1, %s1262_s26  }
  0x16   :  { %s101_s2 = sshll.u32 %s1438_s7, 4  ;;  %s1269_s28 = smov [#allocation10]   ;;  %s102_s2 = int_to_ptr.hbm [resolvable:$true] %s101_s2 }
  0x17   :  { %s75_s29 = sshll.u32 %s1269_s28, 4  ;;  %s1270_s3 = smov [#allocation13]   ;;  %s76_s29 = int_to_ptr.vmem [resolvable:$true] %s75_s29 }
  0x18   :  { %81 = dma.hbm_to_vmem [thread:$0]  %s74_s0, 512, %s76_s29, [#allocation9], %s1261_s1, %s1261_s1, %s1262_s26  }
  0x19   :  { %s103_s4 = sshll.u32 %s1270_s3, 4  ;;  %s1271_s30 = smov 32   ;;  %s104_s4 = int_to_ptr.vmem [resolvable:$true] %s103_s4 }
  0x1a   :  { %s1272_s11 = smov 2   ;;  %s127_s14 = sshll.u32 %s1440_s9, 4  ;;  %s128_s14 = int_to_ptr.hbm [resolvable:$true] %s127_s14 }
  0x1b   :  { %109 = dma.hbm_to_vmem [thread:$0]  %s102_s2, 128, %s104_s4, [#allocation12], %s1271_s30, %s1271_s30, %s1272_s11  }
  0x1c   :  { %s1273_s7 = smov [#allocation16]   ;;  %s1274_s16 = smov 1  }
  0x1d   :  { %s129_s15 = sshll.u32 %s1273_s7, 4  ;;  %s130_s15 = int_to_ptr.vmem [resolvable:$true] %s129_s15 }
  0x1e   :  { %135 = dma.hbm_to_vmem [thread:$0]  %s128_s14, 64, %s130_s15, [#allocation15], %s1265_s12, %s1265_s12, %s1274_s16  }
  0x1f   :  { %1247 = dma.done.wait [#allocation3], 128  }
  0x20   :  { %1248 = vsyncadd [#allocation3], 4294967168 }
  0x21   :  { %1249 = dma.done.wait [#allocation6], 384  }
  0x22   :  { %1250 = vsyncadd [#allocation6], 4294966912 }
  0x23   :  { %1251 = dma.done.wait [#allocation9], 768  }
  0x24   :  { %1252 = vsyncadd [#allocation9], 4294966528 }
  0x25   :  { %1253 = dma.done.wait [#allocation12], 16512  }
  0x26   :  { %1254 = vsyncadd [#allocation12], 4294950784 }
  0x27   :  { %1255 = dma.done.wait [#allocation15], 8256  }
  0x28   :  { %1256 = vsyncadd [#allocation15], 4294959040  ;;  %v176_v0 = vld [vmem:[#allocation10 + $0x18] sm:$0xff]  ;;  %v175_v1 = vld [vmem:[#allocation10 + $0x10] sm:$0xff]  ;;  %vm181_vm0 = vcmask 261120   ;;  %vm324_vm7 = vcmask 130048  }
  0x29   :  { %197 = vmatpush.msra.mxu0 %v176_v0  ;;  %v1373_v2 = vld [vmem:[#allocation5] sm:$0xff]  ;;  %v174_v3 = vld [vmem:[#allocation10 + $0x8] sm:$0xff]  ;;  %v173_v5 = vld [vmem:[#allocation10] sm:$0xff]  ;;  %s955_s19 = sshll.u32 %s1441_s10, 4  ;;  %s956_s19 = int_to_ptr.hbm [resolvable:$true] %s955_s19 }
  0x2a   :  { %v206_v4 = vmul.f32 %v1373_v2, %v1373_v2  ;;  %v172_v6 = vld [vmem:[#allocation2] sm:$0xff]  ;;  %v271_v7 = vld [vmem:[#allocation11 + $0xf8] sm:$0xff]  ;;  %v269_v9 = vld [vmem:[#allocation11 + $0xe8] sm:$0xff] }
  0x2b   :  { %198 = vmatpush.msra.mxu0 %v175_v1  ;;  %v270_v8 = vld [vmem:[#allocation11 + $0xf0] sm:$0xff]  ;;  %301 = vmatpush.msra.mxu2 %v271_v7  ;;  %v268_v10 = vld [vmem:[#allocation11 + $0xe0] sm:$0xff]  ;;  %v267_v11 = vld [vmem:[#allocation11 + $0xd8] sm:$0xff] }
  0x2c   :  { %208 = vadd.xlane.f32.xlu0 %v206_v4  ;;  %278 = vmatpush.msra.mxu1 %v270_v8  ;;  %v266_v12 = vld [vmem:[#allocation11 + $0xd0] sm:$0xff]  ;;  %v265_v13 = vld [vmem:[#allocation11 + $0xc8] sm:$0xff]  ;;  %v264_v14 = vld [vmem:[#allocation11 + $0xc0] sm:$0xff] }
  0x2d   :  { %199 = vmatpush.msra.mxu0 %v174_v3  ;;  %302 = vmatpush.msra.mxu2 %v269_v9  ;;  %v263_v15 = vld [vmem:[#allocation11 + $0xb8] sm:$0xff]  ;;  %v262_v16 = vld [vmem:[#allocation11 + $0xb0] sm:$0xff]  ;;  %v261_v17 = vld [vmem:[#allocation11 + $0xa8] sm:$0xff] }
  0x2e   :  { %279 = vmatpush.msra.mxu1 %v268_v10  ;;  %v260_v18 = vld [vmem:[#allocation11 + $0xa0] sm:$0xff]  ;;  %v259_v19 = vld [vmem:[#allocation11 + $0x98] sm:$0xff]  ;;  %v258_v20 = vld [vmem:[#allocation11 + $0x90] sm:$0xff] }
  0x2f   :  { %200 = vmatpush.msra.mxu0 %v173_v5  ;;  %303 = vmatpush.msra.mxu2 %v267_v11  ;;  %v257_v21 = vld [vmem:[#allocation11 + $0x88] sm:$0xff]  ;;  %v256_v22 = vld [vmem:[#allocation11 + $0x80] sm:$0xff]  ;;  %v255_v25 = vld [vmem:[#allocation11 + $0x78] sm:$0xff] }
  0x30   :  { %972 = vmatmul.msk.f32.vlgmr.msra.gmra.mxu0 %vm181_vm0, %v172_v6  ;;  %280 = vmatpush.msra.mxu1 %v266_v12  ;;  %v254_v26 = vld [vmem:[#allocation11 + $0x70] sm:$0xff]  ;;  %v253_v27 = vld [vmem:[#allocation11 + $0x68] sm:$0xff]  ;;  %v252_v28 = vld [vmem:[#allocation11 + $0x60] sm:$0xff] }
  0x31   :  { %304 = vmatpush.msra.mxu2 %v265_v13  ;;  %v251_v29 = vld [vmem:[#allocation11 + $0x58] sm:$0xff]  ;;  %v250_v30 = vld [vmem:[#allocation11 + $0x50] sm:$0xff]  ;;  %v249_v31 = vld [vmem:[#allocation11 + $0x48] sm:$0xff] }
  0x32   :  { %281 = vmatpush.msra.mxu1 %v264_v14  ;;  %v248_v32 = vld [vmem:[#allocation11 + $0x40] sm:$0xff]  ;;  %v247_v34 = vld [vmem:[#allocation11 + $0x38] sm:$0xff]  ;;  %v246_v35 = vld [vmem:[#allocation11 + $0x30] sm:$0xff] }
  0x33   :  { %305 = vmatpush.msra.mxu2 %v263_v15  ;;  %v998_v37 = vld [vmem:[%s1436_s5] ss:$0 sm:$0xff]  ;;  %v245_v38 = vld [vmem:[#allocation11 + $0x28] sm:$0xff]  ;;  %v244_v39 = vld [vmem:[#allocation11 + $0x20] sm:$0xff]  ;;  %s1275_s5 = smov [#allocation17]  }
  0x34   :  { %282 = vmatpush.msra.mxu1 %v262_v16  ;;  %v243_v41 = vld [vmem:[#allocation11 + $0x18] sm:$0xff]  ;;  %v242_v42 = vld [vmem:[#allocation11 + $0x10] sm:$0xff]  ;;  %v241_v46 = vld [vmem:[#allocation11 + $0x8] sm:$0xff]  ;;  %s953_s17 = sshll.u32 %s1275_s5, 4  ;;  %s954_s17 = int_to_ptr.vmem [resolvable:$true] %s953_s17 }
  0x35   :  { %306 = vmatpush.msra.mxu2 %v261_v17  ;;  %v240_v47 = vld [vmem:[#allocation11] sm:$0xff]  ;;  %v382_v0 = vld [vmem:[#allocation14 + $0x70] sm:$0xff]  ;;  %v381_v1 = vld [vmem:[#allocation14 + $0x68] sm:$0xff] }
  0x36   :  { %283 = vmatpush.msra.mxu1 %v260_v18  ;;  %v383_v63 = vld [vmem:[#allocation14 + $0x78] sm:$0xff]  ;;  %v378_v4 = vld [vmem:[#allocation14 + $0x50] sm:$0xff]  ;;  %v377_v6 = vld [vmem:[#allocation14 + $0x48] sm:$0xff] }
  0x37   :  { %307 = vmatpush.msra.mxu2 %v259_v19  ;;  %388 = vmatpush.msra.mxu3 %v383_v63  ;;  %v379_v3 = vld [vmem:[#allocation14 + $0x58] sm:$0xff]  ;;  %v376_v7 = vld [vmem:[#allocation14 + $0x40] sm:$0xff]  ;;  %v374_v10 = vld [vmem:[#allocation14 + $0x30] sm:$0xff] }
  0x38   :  { %284 = vmatpush.msra.mxu1 %v258_v20  ;;  %v1381_v8 = vld [vmem:[#allocation13] sm:$0x3]  ;;  %v373_v13 = vld [vmem:[#allocation14 + $0x28] sm:$0xff]  ;;  %v372_v15 = vld [vmem:[#allocation14 + $0x20] sm:$0xff] }
  0x39   :  { %308 = vmatpush.msra.mxu2 %v257_v21  ;;  %389 = vmatpush.msra.mxu3 %v382_v0  ;;  %v375_v9 = vld [vmem:[#allocation14 + $0x38] sm:$0xff]  ;;  %v274_v11 = vperm.slane %v1381_v8, 0  ;;  %v1384_v17 = vld [vmem:[#allocation8] sm:$0xff]  ;;  %v370_v19 = vld [vmem:[#allocation14 + $0x10] sm:$0xff] }
  0x3a   :  { %285 = vmatpush.msra.mxu1 %v256_v22  ;;  %v371_v18 = vld [vmem:[#allocation14 + $0x18] sm:$0xff]  ;;  %v1388_v20 = vld [vmem:[#allocation8 + $0x8] sm:$0xff]  ;;  %v369_v21 = vld [vmem:[#allocation14 + $0x8] sm:$0xff] }
  0x3b   :  { %309 = vmatpush.msra.mxu2 %v255_v25  ;;  %390 = vmatpush.msra.mxu3 %v381_v1  ;;  %v368_v22 = vld [vmem:[#allocation14] sm:$0xff]  ;;  %v448_v25 = vld [vmem:[#allocation11 + $0x1e0] sm:$0xff] }
  0x3c   :  { %286 = vmatpush.msra.mxu1 %v254_v26  ;;  %v449_v26 = vld [vmem:[#allocation11 + $0x1e8] sm:$0xff] }
  0x3d   :  { %310 = vmatpush.msra.mxu2 %v253_v27  ;;  %v446_v27 = vld [vmem:[#allocation11 + $0x1d0] sm:$0xff] }
  0x3e   :  { %287 = vmatpush.msra.mxu1 %v252_v28  ;;  %v447_v28 = vld [vmem:[#allocation11 + $0x1d8] sm:$0xff] }
  0x3f   :  { %311 = vmatpush.msra.mxu2 %v251_v29  ;;  %v444_v29 = vld [vmem:[#allocation11 + $0x1c0] sm:$0xff] }
  0x40   :  { %288 = vmatpush.msra.mxu1 %v250_v30  ;;  %v445_v30 = vld [vmem:[#allocation11 + $0x1c8] sm:$0xff] }
  0x41   :  { %312 = vmatpush.msra.mxu2 %v249_v31  ;;  %v442_v31 = vld [vmem:[#allocation11 + $0x1b0] sm:$0xff] }
  0x42   :  { %289 = vmatpush.msra.mxu1 %v248_v32  ;;  %v443_v32 = vld [vmem:[#allocation11 + $0x1b8] sm:$0xff] }
  0x43   :  { %313 = vmatpush.msra.mxu2 %v247_v34  ;;  %v441_v34 = vld [vmem:[#allocation11 + $0x1a8] sm:$0xff] }
  0x44   :  { %290 = vmatpush.msra.mxu1 %v246_v35  ;;  %v438_v35 = vld [vmem:[#allocation11 + $0x190] sm:$0xff] }
  0x45   :  { %314 = vmatpush.msra.mxu2 %v245_v38  ;;  %v437_v38 = vld [vmem:[#allocation11 + $0x188] sm:$0xff] }
  0x46   :  { %291 = vmatpush.msra.mxu1 %v244_v39  ;;  %v434_v39 = vld [vmem:[#allocation11 + $0x170] sm:$0xff] }
  0x47   :  { %315 = vmatpush.msra.mxu2 %v243_v41  ;;  %v432_v41 = vld [vmem:[#allocation11 + $0x160] sm:$0xff] }
  0x48   :  { %292 = vmatpush.msra.mxu1 %v242_v42  ;;  %v433_v42 = vld [vmem:[#allocation11 + $0x168] sm:$0xff] }
  0x49   :  { %316 = vmatpush.msra.mxu2 %v241_v46  ;;  %v428_v46 = vld [vmem:[#allocation11 + $0x140] sm:$0xff] }
  0x4a   :  { %293 = vmatpush.msra.mxu1 %v240_v47  ;;  %v429_v47 = vld [vmem:[#allocation11 + $0x148] sm:$0xff] }
  0x9f   :  { %v209_v23 = vpop.xlane.xlu0 %208 }
  0xa0   :  { %v212_v24 = vmax.f32 %v209_v23, 1e-24  ;;  %v450_v23 = vld [vmem:[#allocation11 + $0x1f0] sm:$0xff] }
  0xa2   :  { %1003 = vrsqrt.f32 %v212_v24  ;;  %vm220_vm1 = vweird.f32 %v212_v24 }
  0xa8   :  { %v1004_v33 = vpop.eup %1003 }
  0xa9   :  { %v215_v36 = vmul.f32 %v1004_v33, %v212_v24  ;;  %vm221_vm2 = vweird.f32 %v1004_v33  ;;  %v451_v24 = vld [vmem:[#allocation11 + $0x1f8] sm:$0xff] }
  0xaa   :  { %vm222_vm3 = vmor %vm220_vm1, %vm221_vm2  ;;  %482 = vmatpush.msrb.mxu1 %v451_v24  ;;  %v1399_v24 = vld [vmem:[#allocation13 + $0x2] sm:$0x3] }
  0xab   :  { %v216_v40 = vmul.f32 %v1004_v33, %v215_v36  ;;  %v439_v36 = vld [vmem:[#allocation11 + $0x198] sm:$0xff] }
  0xac   :  { %483 = vmatpush.msrb.mxu1 %v449_v26 }
  0xad   :  { %v202_v43 = vpop.f32.mrf.mxu0  ;;  %v217_v44 = vmul.f32 0.5, %v216_v40  ;;  %v435_v40 = vld [vmem:[#allocation11 + $0x178] sm:$0xff] }
  0xae   :  { %v203_v45 = vadd.f32 %v998_v37, %v202_v43  ;;  %484 = vmatpush.msrb.mxu1 %v447_v28  ;;  %v436_v37 = vld [vmem:[#allocation11 + $0x180] sm:$0xff]  ;;  %v430_v43 = vld [vmem:[#allocation11 + $0x150] sm:$0xff] }
  0xaf   :  { %v218_v48 = vsub.f32 1.5, %v217_v44  ;;  %v431_v44 = vld [vmem:[#allocation11 + $0x158] sm:$0xff] }
  0xb0   :  { %v207_v49 = vmul.f32 %v203_v45, %v203_v45  ;;  %485 = vmatpush.msrb.mxu1 %v445_v30  ;;  %v557_v30 = vld [vmem:[#allocation14 + $0xf0] sm:$0xff] }
  0xb1   :  { %v219_v50 = vmul.f32 %v1004_v33, %v218_v48 }
  0xb2   :  { %210 = vadd.xlane.f32.xlu0 %v207_v49  ;;  %486 = vmatpush.msrb.mxu1 %v443_v32  ;;  %v555_v32 = vld [vmem:[#allocation14 + $0xe0] sm:$0xff] }
  0xb3   :  { %v223_v51 = vsel %vm222_vm3, %v1004_v33, %v219_v50  ;;  %v440_v33 = vld [vmem:[#allocation11 + $0x1a0] sm:$0xff] }
  0xb4   :  { %v234_v52 = vmul.f32 %v223_v51, %v1373_v2  ;;  %v380_v2 = vld [vmem:[#allocation14 + $0x60] sm:$0xff]  ;;  %487 = vmatpush.msrb.mxu1 %v441_v34  ;;  %v553_v34 = vld [vmem:[#allocation14 + $0xd0] sm:$0xff] }
  0xb5   :  { %391 = vmatpush.msra.mxu3 %v380_v2  ;;  %v999_v2 = vld [vmem:[#allocation16] ss:$0 sm:$0xff] }
  0xb6   :  { %317 = vmatmul.f32.vlgmr.msra.gmra.mxu2 %v234_v52  ;;  %294 = vmatmul.f32.vlgmr.msra.gmra.mxu1 %v234_v52 }
  0xb7   :  { %392 = vmatpush.msra.mxu3 %v379_v3  ;;  %488 = vmatpush.msrb.mxu1 %v439_v36  ;;  %v551_v36 = vld [vmem:[#allocation14 + $0xc0] sm:$0xff] }
  0xb9   :  { %393 = vmatpush.msra.mxu3 %v378_v4  ;;  %489 = vmatpush.msrb.mxu1 %v437_v38  ;;  %v549_v38 = vld [vmem:[#allocation14 + $0xb0] sm:$0xff] }
  0xbb   :  { %394 = vmatpush.msra.mxu3 %v377_v6  ;;  %490 = vmatpush.msrb.mxu1 %v435_v40  ;;  %v547_v40 = vld [vmem:[#allocation14 + $0xa0] sm:$0xff] }
  0xbd   :  { %395 = vmatpush.msra.mxu3 %v376_v7  ;;  %491 = vmatpush.msrb.mxu1 %v433_v42  ;;  %v545_v42 = vld [vmem:[#allocation14 + $0x90] sm:$0xff] }
  0xbf   :  { %396 = vmatpush.msra.mxu3 %v375_v9  ;;  %492 = vmatpush.msrb.mxu1 %v431_v44  ;;  %v543_v44 = vld [vmem:[#allocation14 + $0x80] sm:$0xff] }
  0xc1   :  { %397 = vmatpush.msra.mxu3 %v374_v10  ;;  %493 = vmatpush.msrb.mxu1 %v429_v47  ;;  %v624_v47 = vld [vmem:[#allocation11 + $0x2e0] sm:$0xff] }
  0xc3   :  { %398 = vmatpush.msra.mxu3 %v373_v13  ;;  %v1396_v13 = vld [vmem:[#allocation7 + $0x8] sm:$0xff] }
  0xc5   :  { %399 = vmatpush.msra.mxu3 %v372_v15 }
  0xc7   :  { %400 = vmatpush.msra.mxu3 %v371_v18 }
  0xc9   :  { %401 = vmatpush.msra.mxu3 %v370_v19 }
  0xcb   :  { %402 = vmatpush.msra.mxu3 %v369_v21 }
  0xcd   :  { %403 = vmatpush.msra.mxu3 %v368_v22 }
 0x125   :  { %v211_v53 = vpop.xlane.xlu0 %210 }
 0x126   :  { %v213_v54 = vmax.f32 %v211_v53, 1e-24  ;;  %v426_v53 = vld [vmem:[#allocation11 + $0x130] sm:$0xff] }
 0x128   :  { %1005 = vrsqrt.f32 %v213_v54  ;;  %vm230_vm5 = vweird.f32 %v213_v54 }
 0x12e   :  { %v1006_v55 = vpop.eup %1005 }
 0x12f   :  { %v225_v56 = vmul.f32 %v1006_v55, %v213_v54  ;;  %vm231_vm4 = vweird.f32 %v1006_v55  ;;  %v427_v54 = vld [vmem:[#allocation11 + $0x138] sm:$0xff] }
 0x130   :  { %vm232_vm6 = vmor %vm230_vm5, %vm231_vm4  ;;  %494 = vmatpush.msrb.mxu1 %v427_v54  ;;  %v619_v54 = vld [vmem:[#allocation11 + $0x2b8] sm:$0xff] }
 0x131   :  { %v226_v57 = vmul.f32 %v1006_v55, %v225_v56  ;;  %v425_v56 = vld [vmem:[#allocation11 + $0x128] sm:$0xff] }
 0x132   :  { %495 = vmatpush.msrb.mxu1 %v425_v56  ;;  %v617_v56 = vld [vmem:[#allocation11 + $0x2a8] sm:$0xff] }
 0x133   :  { %v227_v58 = vmul.f32 0.5, %v226_v57  ;;  %v295_v5 = vpop.f32.mrf.mxu1  ;;  %v422_v57 = vld [vmem:[#allocation11 + $0x110] sm:$0xff] }
 0x134   :  { %v296_v16 = vadd.f32 %v295_v5, %v274_v11  ;;  %v1393_v5 = vld [vmem:[#allocation7] sm:$0xff] }
 0x135   :  { %v228_v59 = vsub.f32 1.5, %v227_v58  ;;  %v423_v58 = vld [vmem:[#allocation11 + $0x118] sm:$0xff] }
 0x136   :  { %496 = vmatpush.msrb.mxu1 %v423_v58  ;;  %v615_v58 = vld [vmem:[#allocation11 + $0x298] sm:$0xff] }
 0x137   :  { %v229_v60 = vmul.f32 %v1006_v55, %v228_v59  ;;  %v420_v59 = vld [vmem:[#allocation11 + $0x100] sm:$0xff] }
 0x139   :  { %v233_v61 = vsel %vm232_vm6, %v1006_v55, %v229_v60  ;;  %v424_v55 = vld [vmem:[#allocation11 + $0x120] sm:$0xff]  ;;  %v421_v60 = vld [vmem:[#allocation11 + $0x108] sm:$0xff] }
 0x13a   :  { %v235_v62 = vmul.f32 %v233_v61, %v203_v45  ;;  %497 = vmatpush.msrb.mxu1 %v421_v60  ;;  %v275_v61 = vperm.slane %v1381_v8, 1  ;;  %v613_v60 = vld [vmem:[#allocation11 + $0x288] sm:$0xff] }
 0x13c   :  { %297 = vmatmul.f32.gmra.mxu1 %v235_v62  ;;  %320 = vmatmul.f32.gmra.mxu2 %v235_v62  ;;  %v318_v62 = vpop.f32.mrf.mxu2 }
 0x13d   :  { %v319_v63 = vadd.f32 %v318_v62, %v275_v61  ;;  %v611_v62 = vld [vmem:[#allocation11 + $0x278] sm:$0xff] }
 0x13f   :  { %v362_v0 = vmul.f32 0.01, %v319_v63  ;;  %vm360_vm10 = vcmp.ge.f32.partialorder %v319_v63, 0.0 }
 0x141   :  { %v364_v3 = vsel %vm360_vm10, %v319_v63, %v362_v0  ;;  %v608_v63 = vld [vmem:[#allocation11 + $0x260] sm:$0xff]  ;;  %v609_v0 = vld [vmem:[#allocation11 + $0x268] sm:$0xff] }
 0x142   :  { %v366_v7 = vadd.f32 %v364_v3, %v1393_v5 }
 0x1b9   :  { %v298_v12 = vpop.f32.mrf.mxu1 }
 0x1ba   :  { %v299_v14 = vadd.f32 %v298_v12, %v274_v11 }
 0x1bc   :  { %345 = vmatpush.msrb.mxu0 %v299_v14 }
 0x1be   :  { %346 = vmatpush.msrb.mxu0 %v296_v16 }
 0x1bf   :  { %973 = vmatmul.msk.f32.vlgmr.msrb.gmra.mxu0 %vm324_vm7, %v1384_v17  ;;  %v321_v1 = vpop.f32.mrf.mxu2 }
 0x1c0   :  { %459 = vmatpush.msra.mxu0 %v450_v23  ;;  %v322_v4 = vadd.f32 %v321_v1, %v275_v61  ;;  %v610_v61 = vld [vmem:[#allocation11 + $0x270] sm:$0xff] }
 0x1c1   :  { %v606_v1 = vld [vmem:[#allocation11 + $0x250] sm:$0xff] }
 0x1c2   :  { %460 = vmatpush.msra.mxu0 %v448_v25  ;;  %v363_v10 = vmul.f32 0.01, %v322_v4  ;;  %vm361_vm11 = vcmp.ge.f32.partialorder %v322_v4, 0.0  ;;  %v455_v25 = vperm.slane %v1399_v24, 0 }
 0x1c4   :  { %461 = vmatpush.msra.mxu0 %v446_v27  ;;  %v365_v8 = vsel %vm361_vm11, %v322_v4, %v363_v10  ;;  %v604_v4 = vld [vmem:[#allocation11 + $0x240] sm:$0xff] }
 0x1c5   :  { %v367_v16 = vadd.f32 %v365_v8, %v1396_v13  ;;  %v602_v8 = vld [vmem:[#allocation11 + $0x230] sm:$0xff] }
 0x1c6   :  { %462 = vmatpush.msra.mxu0 %v444_v29  ;;  %v558_v29 = vld [vmem:[#allocation14 + $0xf8] sm:$0xff] }
 0x1c7   :  { %974 = vmatmul.msk.f32.gmra.mxu0 %vm324_vm7, %v1388_v20 }
 0x1c8   :  { %463 = vmatpush.msra.mxu0 %v442_v31  ;;  %v556_v31 = vld [vmem:[#allocation14 + $0xe8] sm:$0xff] }
 0x1ca   :  { %464 = vmatpush.msra.mxu0 %v440_v33  ;;  %v554_v33 = vld [vmem:[#allocation14 + $0xd8] sm:$0xff] }
 0x1cc   :  { %465 = vmatpush.msra.mxu0 %v438_v35  ;;  %v552_v35 = vld [vmem:[#allocation14 + $0xc8] sm:$0xff] }
 0x1ce   :  { %466 = vmatpush.msra.mxu0 %v436_v37  ;;  %v550_v37 = vld [vmem:[#allocation14 + $0xb8] sm:$0xff] }
 0x1d0   :  { %467 = vmatpush.msra.mxu0 %v434_v39  ;;  %v548_v39 = vld [vmem:[#allocation14 + $0xa8] sm:$0xff] }
 0x1d2   :  { %468 = vmatpush.msra.mxu0 %v432_v41  ;;  %v546_v41 = vld [vmem:[#allocation14 + $0x98] sm:$0xff] }
 0x1d4   :  { %469 = vmatpush.msra.mxu0 %v430_v43  ;;  %v544_v43 = vld [vmem:[#allocation14 + $0x88] sm:$0xff] }
 0x1d6   :  { %470 = vmatpush.msra.mxu0 %v428_v46  ;;  %v627_v46 = vld [vmem:[#allocation11 + $0x2f8] sm:$0xff] }
 0x1d7   :  { %658 = vmatpush.msrb.mxu2 %v627_v46  ;;  %v733_v46 = vld [vmem:[#allocation14 + $0x170] sm:$0xff] }
 0x1d8   :  { %471 = vmatpush.msra.mxu0 %v426_v53  ;;  %v618_v53 = vld [vmem:[#allocation11 + $0x2b0] sm:$0xff] }
 0x1da   :  { %472 = vmatpush.msra.mxu0 %v424_v55  ;;  %v616_v55 = vld [vmem:[#allocation11 + $0x2a0] sm:$0xff] }
 0x1dc   :  { %473 = vmatpush.msra.mxu0 %v422_v57  ;;  %v614_v57 = vld [vmem:[#allocation11 + $0x290] sm:$0xff] }
 0x1de   :  { %474 = vmatpush.msra.mxu0 %v420_v59  ;;  %v612_v59 = vld [vmem:[#allocation11 + $0x280] sm:$0xff] }
 0x23c   :  { %v348_v45 = vpop.f32.mrf.mxu0 }
 0x23d   :  { %v356_v48 = vmul.f32 0.01, %v348_v45  ;;  %vm354_vm8 = vcmp.ge.f32.partialorder %v348_v45, 0.0 }
 0x23f   :  { %v358_v49 = vsel %vm354_vm8, %v348_v45, %v356_v48  ;;  %v626_v45 = vld [vmem:[#allocation11 + $0x2f0] sm:$0xff]  ;;  %v625_v48 = vld [vmem:[#allocation11 + $0x2e8] sm:$0xff] }
 0x240   :  { %404 = vmatmul.f32.vlgmr.msra.gmra.mxu3 %v358_v49  ;;  %635 = vmatpush.msrb.mxu0 %v626_v45  ;;  %v622_v49 = vld [vmem:[#allocation11 + $0x2d0] sm:$0xff]  ;;  %v734_v45 = vld [vmem:[#allocation14 + $0x178] sm:$0xff] }
 0x241   :  { %659 = vmatpush.msrb.mxu2 %v625_v48  ;;  %v731_v48 = vld [vmem:[#allocation14 + $0x160] sm:$0xff] }
 0x242   :  { %636 = vmatpush.msrb.mxu0 %v624_v47  ;;  %v732_v47 = vld [vmem:[#allocation14 + $0x168] sm:$0xff] }
 0x244   :  { %v351_v50 = vpop.f32.mrf.mxu0  ;;  %637 = vmatpush.msrb.mxu0 %v622_v49  ;;  %v730_v49 = vld [vmem:[#allocation14 + $0x158] sm:$0xff] }
 0x245   :  { %v357_v51 = vmul.f32 0.01, %v351_v50  ;;  %vm355_vm9 = vcmp.ge.f32.partialorder %v351_v50, 0.0 }
 0x247   :  { %v359_v52 = vsel %vm355_vm9, %v351_v50, %v357_v51  ;;  %v623_v50 = vld [vmem:[#allocation11 + $0x2d8] sm:$0xff]  ;;  %v620_v51 = vld [vmem:[#allocation11 + $0x2c0] sm:$0xff] }
 0x248   :  { %407 = vmatmul.f32.gmra.mxu3 %v359_v52  ;;  %v621_v52 = vld [vmem:[#allocation11 + $0x2c8] sm:$0xff]  ;;  %660 = vmatpush.msrb.mxu2 %v623_v50  ;;  %v729_v50 = vld [vmem:[#allocation14 + $0x150] sm:$0xff] }
 0x249   :  { %638 = vmatpush.msrb.mxu0 %v620_v51 }
 0x24a   :  { %661 = vmatpush.msrb.mxu2 %v621_v52  ;;  %v728_v52 = vld [vmem:[#allocation14 + $0x148] sm:$0xff] }
 0x24b   :  { %639 = vmatpush.msrb.mxu0 %v618_v53  ;;  %v727_v53 = vld [vmem:[#allocation14 + $0x140] sm:$0xff] }
 0x24c   :  { %662 = vmatpush.msrb.mxu2 %v619_v54  ;;  %v1409_v54 = vld [vmem:[#allocation13 + $0x4] sm:$0x3] }
 0x24d   :  { %640 = vmatpush.msrb.mxu0 %v616_v55  ;;  %v726_v55 = vld [vmem:[#allocation14 + $0x138] sm:$0xff] }
 0x24e   :  { %663 = vmatpush.msrb.mxu2 %v617_v56  ;;  %v725_v56 = vld [vmem:[#allocation14 + $0x130] sm:$0xff] }
 0x24f   :  { %641 = vmatpush.msrb.mxu0 %v614_v57  ;;  %v631_v57 = vperm.slane %v1409_v54, 0 }
 0x250   :  { %664 = vmatpush.msrb.mxu2 %v615_v58 }
 0x251   :  { %642 = vmatpush.msrb.mxu0 %v612_v59  ;;  %v724_v59 = vld [vmem:[#allocation14 + $0x128] sm:$0xff] }
 0x252   :  { %665 = vmatpush.msrb.mxu2 %v613_v60 }
 0x253   :  { %643 = vmatpush.msrb.mxu0 %v610_v61  ;;  %v723_v61 = vld [vmem:[#allocation14 + $0x120] sm:$0xff] }
 0x254   :  { %666 = vmatpush.msrb.mxu2 %v611_v62 }
 0x255   :  { %644 = vmatpush.msrb.mxu0 %v608_v63  ;;  %v722_v63 = vld [vmem:[#allocation14 + $0x118] sm:$0xff] }
 0x256   :  { %667 = vmatpush.msrb.mxu2 %v609_v0  ;;  %v721_v0 = vld [vmem:[#allocation14 + $0x110] sm:$0xff] }
 0x257   :  { %645 = vmatpush.msrb.mxu0 %v606_v1  ;;  %v720_v1 = vld [vmem:[#allocation14 + $0x108] sm:$0xff] }
 0x259   :  { %646 = vmatpush.msrb.mxu0 %v604_v4  ;;  %v803_v4 = vld [vmem:[#allocation11 + $0x3f8] sm:$0xff] }
 0x25b   :  { %647 = vmatpush.msrb.mxu0 %v602_v8  ;;  %v794_v8 = vld [vmem:[#allocation11 + $0x3b0] sm:$0xff] }
 0x2c3   :  { %v405_v6 = vpop.f32.mrf.mxu3 }
 0x2c4   :  { %v406_v9 = vadd.f32 %v999_v2, %v405_v6  ;;  %v605_v6 = vld [vmem:[#allocation11 + $0x248] sm:$0xff] }
 0x2c6   :  { %v411_v11 = vadd.f32 %v406_v9, %v366_v7 }
 0x2c8   :  { %v415_v12 = vmul.f32 0.01, %v411_v11  ;;  %vm413_vm12 = vcmp.ge.f32.partialorder %v411_v11, 0.0 }
 0x2ca   :  { %v417_v14 = vsel %vm413_vm12, %v411_v11, %v415_v12 }
 0x2cb   :  { %v408_v15 = vpop.f32.mrf.mxu3  ;;  %475 = vmatmul.f32.vlgmr.msra.gmra.mxu0 %v417_v14  ;;  %498 = vmatmul.f32.vlgmr.msrb.gmra.mxu1 %v417_v14  ;;  %v603_v14 = vld [vmem:[#allocation11 + $0x238] sm:$0xff] }
 0x2cc   :  { %v409_v18 = vadd.f32 %v999_v2, %v408_v15  ;;  %v607_v2 = vld [vmem:[#allocation11 + $0x258] sm:$0xff]  ;;  %v600_v15 = vld [vmem:[#allocation11 + $0x220] sm:$0xff] }
 0x2cd   :  { %668 = vmatpush.msrb.mxu2 %v607_v2  ;;  %648 = vmatpush.msrb.mxu0 %v600_v15  ;;  %v719_v2 = vld [vmem:[#allocation14 + $0x100] sm:$0xff]  ;;  %v792_v15 = vld [vmem:[#allocation11 + $0x3a0] sm:$0xff] }
 0x2ce   :  { %v412_v19 = vadd.f32 %v409_v18, %v367_v16  ;;  %v601_v16 = vld [vmem:[#allocation11 + $0x228] sm:$0xff]  ;;  %v598_v18 = vld [vmem:[#allocation11 + $0x210] sm:$0xff] }
 0x2cf   :  { %669 = vmatpush.msrb.mxu2 %v605_v6  ;;  %649 = vmatpush.msrb.mxu0 %v598_v18  ;;  %v800_v6 = vld [vmem:[#allocation11 + $0x3e0] sm:$0xff]  ;;  %v790_v18 = vld [vmem:[#allocation11 + $0x390] sm:$0xff] }
 0x2d0   :  { %vm414_vm13 = vcmp.ge.f32.partialorder %v412_v19, 0.0  ;;  %v416_v21 = vmul.f32 0.01, %v412_v19 }
 0x2d1   :  { %670 = vmatpush.msrb.mxu2 %v603_v14  ;;  %v795_v14 = vld [vmem:[#allocation11 + $0x3b8] sm:$0xff] }
 0x2d2   :  { %v418_v22 = vsel %vm414_vm13, %v412_v19, %v416_v21  ;;  %v599_v19 = vld [vmem:[#allocation11 + $0x218] sm:$0xff]  ;;  %v596_v21 = vld [vmem:[#allocation11 + $0x200] sm:$0xff] }
 0x2d3   :  { %478 = vmatmul.f32.gmra.mxu0 %v418_v22  ;;  %501 = vmatmul.f32.gmra.mxu1 %v418_v22  ;;  %v597_v22 = vld [vmem:[#allocation11 + $0x208] sm:$0xff] }
 0x2d4   :  { %671 = vmatpush.msrb.mxu2 %v601_v16  ;;  %650 = vmatpush.msrb.mxu0 %v596_v21  ;;  %v793_v16 = vld [vmem:[#allocation11 + $0x3a8] sm:$0xff]  ;;  %v788_v21 = vld [vmem:[#allocation11 + $0x380] sm:$0xff] }
 0x2d6   :  { %672 = vmatpush.msrb.mxu2 %v599_v19  ;;  %v791_v19 = vld [vmem:[#allocation11 + $0x398] sm:$0xff] }
 0x2d8   :  { %673 = vmatpush.msrb.mxu2 %v597_v22  ;;  %v789_v22 = vld [vmem:[#allocation11 + $0x388] sm:$0xff] }
 0x348   :  { %v476_v23 = vpop.f32.mrf.mxu0 }
 0x349   :  { %v477_v28 = vadd.f32 %v476_v23, %v455_v25  ;;  %v499_v23 = vpop.f32.mrf.mxu1 }
 0x350   :  { %v479_v26 = vpop.f32.mrf.mxu0 }
 0x351   :  { %v480_v27 = vadd.f32 %v479_v26, %v455_v25  ;;  %v456_v25 = vperm.slane %v1399_v24, 1 }
 0x353   :  { %519 = vmatpush.msrb.mxu3 %v480_v27  ;;  %v500_v26 = vadd.f32 %v499_v23, %v456_v25  ;;  %v786_v23 = vld [vmem:[#allocation11 + $0x370] sm:$0xff] }
 0x355   :  { %520 = vmatpush.msrb.mxu3 %v477_v28  ;;  %v536_v27 = vmul.f32 0.01, %v500_v26  ;;  %vm534_vm0 = vcmp.ge.f32.partialorder %v500_v26, 0.0  ;;  %v502_v28 = vpop.f32.mrf.mxu1 }
 0x356   :  { %975 = vmatmul.msk.f32.vlgmr.msrb.gmra.mxu3 %vm324_vm7, %v1384_v17 }
 0x357   :  { %564 = vmatpush.msra.mxu3 %v558_v29  ;;  %v1000_v29 = vld [vmem:[#allocation16 + $0x1] ss:$0 sm:$0xff] }
 0x359   :  { %565 = vmatpush.msra.mxu3 %v557_v30  ;;  %v538_v30 = vsel %vm534_vm0, %v500_v26, %v536_v27  ;;  %v784_v26 = vld [vmem:[#allocation11 + $0x360] sm:$0xff]  ;;  %v785_v27 = vld [vmem:[#allocation11 + $0x368] sm:$0xff] }
 0x35b   :  { %566 = vmatpush.msra.mxu3 %v556_v31  ;;  %v503_v31 = vadd.f32 %v502_v28, %v456_v25  ;;  %v787_v25 = vld [vmem:[#allocation11 + $0x378] sm:$0xff]  ;;  %v782_v28 = vld [vmem:[#allocation11 + $0x350] sm:$0xff] }
 0x35d   :  { %567 = vmatpush.msra.mxu3 %v555_v32  ;;  %vm535_vm1 = vcmp.ge.f32.partialorder %v503_v31, 0.0 }
 0x35e   :  { %976 = vmatmul.msk.f32.gmra.mxu3 %vm324_vm7, %v1388_v20 }
 0x35f   :  { %568 = vmatpush.msra.mxu3 %v554_v33  ;;  %v540_v33 = vadd.f32 %v538_v30, %v1393_v5 }
 0x361   :  { %569 = vmatpush.msra.mxu3 %v553_v34 }
 0x363   :  { %570 = vmatpush.msra.mxu3 %v552_v35  ;;  %v537_v35 = vmul.f32 0.01, %v503_v31 }
 0x365   :  { %571 = vmatpush.msra.mxu3 %v551_v36 }
 0x367   :  { %572 = vmatpush.msra.mxu3 %v550_v37 }
 0x369   :  { %573 = vmatpush.msra.mxu3 %v549_v38  ;;  %v539_v38 = vsel %vm535_vm1, %v503_v31, %v537_v35  ;;  %v780_v31 = vld [vmem:[#allocation11 + $0x340] sm:$0xff] }
 0x36a   :  { %v541_v24 = vadd.f32 %v539_v38, %v1396_v13  ;;  %v778_v38 = vld [vmem:[#allocation11 + $0x330] sm:$0xff] }
 0x36b   :  { %574 = vmatpush.msra.mxu3 %v548_v39 }
 0x36d   :  { %575 = vmatpush.msra.mxu3 %v547_v40 }
 0x36f   :  { %576 = vmatpush.msra.mxu3 %v546_v41 }
 0x371   :  { %577 = vmatpush.msra.mxu3 %v545_v42 }
 0x373   :  { %578 = vmatpush.msra.mxu3 %v544_v43 }
 0x375   :  { %579 = vmatpush.msra.mxu3 %v543_v44 }
 0x377   :  { %740 = vmatpush.msrb.mxu3 %v734_v45 }
 0x379   :  { %741 = vmatpush.msrb.mxu3 %v733_v46  ;;  %v632_v46 = vperm.slane %v1409_v54, 1 }
 0x37b   :  { %742 = vmatpush.msrb.mxu3 %v732_v47 }
 0x37d   :  { %743 = vmatpush.msrb.mxu3 %v731_v48 }
 0x37f   :  { %744 = vmatpush.msrb.mxu3 %v730_v49 }
 0x381   :  { %745 = vmatpush.msrb.mxu3 %v729_v50  ;;  %v1001_v50 = vld [vmem:[#allocation16 + $0x2] ss:$0 sm:$0xff] }
 0x383   :  { %746 = vmatpush.msrb.mxu3 %v728_v52 }
 0x385   :  { %747 = vmatpush.msrb.mxu3 %v727_v53 }
 0x387   :  { %748 = vmatpush.msrb.mxu3 %v726_v55 }
 0x389   :  { %749 = vmatpush.msrb.mxu3 %v725_v56 }
 0x38b   :  { %750 = vmatpush.msrb.mxu3 %v724_v59 }
 0x38d   :  { %751 = vmatpush.msrb.mxu3 %v723_v61 }
 0x38f   :  { %752 = vmatpush.msrb.mxu3 %v722_v63 }
 0x391   :  { %753 = vmatpush.msrb.mxu3 %v721_v0 }
 0x393   :  { %754 = vmatpush.msrb.mxu3 %v720_v1 }
 0x395   :  { %755 = vmatpush.msrb.mxu3 %v719_v2 }
 0x3d9   :  { %v522_v3 = vpop.f32.mrf.mxu3 }
 0x3da   :  { %vm528_vm14 = vcmp.ge.f32.partialorder %v522_v3, 0.0  ;;  %v530_v7 = vmul.f32 0.01, %v522_v3 }
 0x3dc   :  { %v532_v9 = vsel %vm528_vm14, %v522_v3, %v530_v7  ;;  %v802_v3 = vld [vmem:[#allocation11 + $0x3f0] sm:$0xff]  ;;  %v801_v7 = vld [vmem:[#allocation11 + $0x3e8] sm:$0xff] }
 0x3dd   :  { %580 = vmatmul.f32.vlgmr.msra.gmra.mxu3 %v532_v9  ;;  %811 = vmatpush.msra.mxu0 %v802_v3  ;;  %v798_v9 = vld [vmem:[#allocation11 + $0x3d0] sm:$0xff] }
 0x3df   :  { %812 = vmatpush.msra.mxu0 %v800_v6 }
 0x3e1   :  { %v525_v10 = vpop.f32.mrf.mxu3  ;;  %813 = vmatpush.msra.mxu0 %v798_v9 }
 0x3e2   :  { %v531_v11 = vmul.f32 0.01, %v525_v10  ;;  %vm529_vm15 = vcmp.ge.f32.partialorder %v525_v10, 0.0 }
 0x3e4   :  { %v533_v12 = vsel %vm529_vm15, %v525_v10, %v531_v11  ;;  %v799_v10 = vld [vmem:[#allocation11 + $0x3d8] sm:$0xff]  ;;  %v796_v11 = vld [vmem:[#allocation11 + $0x3c0] sm:$0xff] }
 0x3e5   :  { %583 = vmatmul.f32.gmra.mxu3 %v533_v12  ;;  %v797_v12 = vld [vmem:[#allocation11 + $0x3c8] sm:$0xff]  ;;  %814 = vmatpush.msra.mxu0 %v796_v11  ;;  %v910_v11 = vld [vmem:[#allocation14 + $0x1f8] sm:$0xff] }
 0x3e7   :  { %815 = vmatpush.msra.mxu0 %v794_v8  ;;  %v908_v8 = vld [vmem:[#allocation14 + $0x1e8] sm:$0xff] }
 0x3e9   :  { %816 = vmatpush.msra.mxu0 %v792_v15  ;;  %v906_v15 = vld [vmem:[#allocation14 + $0x1d8] sm:$0xff] }
 0x3eb   :  { %817 = vmatpush.msra.mxu0 %v790_v18  ;;  %v904_v18 = vld [vmem:[#allocation14 + $0x1c8] sm:$0xff] }
 0x3ed   :  { %818 = vmatpush.msra.mxu0 %v788_v21  ;;  %v902_v21 = vld [vmem:[#allocation14 + $0x1b8] sm:$0xff] }
 0x3ef   :  { %819 = vmatpush.msra.mxu0 %v786_v23  ;;  %v899_v23 = vld [vmem:[#allocation14 + $0x1a0] sm:$0xff] }
 0x3f1   :  { %820 = vmatpush.msra.mxu0 %v784_v26  ;;  %v897_v26 = vld [vmem:[#allocation14 + $0x190] sm:$0xff] }
 0x3f3   :  { %821 = vmatpush.msra.mxu0 %v782_v28 }
 0x3f5   :  { %822 = vmatpush.msra.mxu0 %v780_v31 }
 0x3f7   :  { %823 = vmatpush.msra.mxu0 %v778_v38 }
 0x460   :  { %v581_v32 = vpop.f32.mrf.mxu3 }
 0x461   :  { %v582_v34 = vadd.f32 %v1000_v29, %v581_v32  ;;  %v781_v32 = vld [vmem:[#allocation11 + $0x348] sm:$0xff] }
 0x463   :  { %v587_v36 = vadd.f32 %v582_v34, %v540_v33 }
 0x465   :  { %v591_v37 = vmul.f32 0.01, %v587_v36  ;;  %vm589_vm2 = vcmp.ge.f32.partialorder %v587_v36, 0.0 }
 0x467   :  { %v593_v39 = vsel %vm589_vm2, %v587_v36, %v591_v37 }
 0x468   :  { %v584_v40 = vpop.f32.mrf.mxu3  ;;  %651 = vmatmul.f32.vlgmr.msrb.gmra.mxu0 %v593_v39  ;;  %674 = vmatmul.f32.vlgmr.msrb.gmra.mxu2 %v593_v39  ;;  %v779_v39 = vld [vmem:[#allocation11 + $0x338] sm:$0xff] }
 0x469   :  { %v585_v41 = vadd.f32 %v1000_v29, %v584_v40  ;;  %v783_v29 = vld [vmem:[#allocation11 + $0x358] sm:$0xff]  ;;  %v776_v40 = vld [vmem:[#allocation11 + $0x320] sm:$0xff] }
 0x46a   :  { %824 = vmatpush.msra.mxu0 %v776_v40 }
 0x46b   :  { %v588_v42 = vadd.f32 %v585_v41, %v541_v24  ;;  %v777_v24 = vld [vmem:[#allocation11 + $0x328] sm:$0xff]  ;;  %v774_v41 = vld [vmem:[#allocation11 + $0x310] sm:$0xff] }
 0x46c   :  { %825 = vmatpush.msra.mxu0 %v774_v41 }
 0x46d   :  { %vm590_vm3 = vcmp.ge.f32.partialorder %v588_v42, 0.0  ;;  %v592_v43 = vmul.f32 0.01, %v588_v42 }
 0x46f   :  { %v594_v44 = vsel %vm590_vm3, %v588_v42, %v592_v43  ;;  %v775_v42 = vld [vmem:[#allocation11 + $0x318] sm:$0xff]  ;;  %v772_v43 = vld [vmem:[#allocation11 + $0x300] sm:$0xff] }
 0x470   :  { %654 = vmatmul.f32.gmra.mxu0 %v594_v44  ;;  %677 = vmatmul.f32.gmra.mxu2 %v594_v44  ;;  %v773_v44 = vld [vmem:[#allocation11 + $0x308] sm:$0xff] }
 0x471   :  { %826 = vmatpush.msra.mxu0 %v772_v43 }
 0x4e5   :  { %v652_v51 = vpop.f32.mrf.mxu0 }
 0x4e6   :  { %v653_v62 = vadd.f32 %v652_v51, %v631_v57 }
 0x4eb   :  { %v675_v45 = vpop.f32.mrf.mxu2 }
 0x4ec   :  { %v676_v47 = vadd.f32 %v675_v45, %v632_v46 }
 0x4ed   :  { %v655_v58 = vpop.f32.mrf.mxu0 }
 0x4ee   :  { %v656_v60 = vadd.f32 %v655_v58, %v631_v57  ;;  %v712_v48 = vmul.f32 0.01, %v676_v47  ;;  %vm710_vm6 = vcmp.ge.f32.partialorder %v676_v47, 0.0 }
 0x4f0   :  { %695 = vmatpush.msra.mxu1 %v656_v60  ;;  %v714_v51 = vsel %vm710_vm6, %v676_v47, %v712_v48 }
 0x4f1   :  { %v716_v55 = vadd.f32 %v714_v51, %v1393_v5 }
 0x4f2   :  { %696 = vmatpush.msra.mxu1 %v653_v62 }
 0x4f3   :  { %977 = vmatmul.msk.f32.vlgmr.msra.gmra.mxu1 %vm324_vm7, %v1384_v17  ;;  %v678_v49 = vpop.f32.mrf.mxu2 }
 0x4f4   :  { %834 = vmatpush.msrb.mxu1 %v803_v4  ;;  %v679_v52 = vadd.f32 %v678_v49, %v632_v46  ;;  %v805_v4 = vld [vmem:[#allocation13 + $0x6] sm:$0x3] }
 0x4f5   :  { %v807_v6 = vperm.slane %v805_v4, 0 }
 0x4f6   :  { %835 = vmatpush.msrb.mxu1 %v801_v7  ;;  %v713_v57 = vmul.f32 0.01, %v679_v52  ;;  %vm711_vm8 = vcmp.ge.f32.partialorder %v679_v52, 0.0 }
 0x4f8   :  { %836 = vmatpush.msrb.mxu1 %v799_v10  ;;  %v715_v60 = vsel %vm711_vm8, %v679_v52, %v713_v57 }
 0x4f9   :  { %v717_v54 = vadd.f32 %v715_v60, %v1396_v13 }
 0x4fa   :  { %837 = vmatpush.msrb.mxu1 %v797_v12  ;;  %v909_v12 = vld [vmem:[#allocation14 + $0x1f0] sm:$0xff] }
 0x4fb   :  { %978 = vmatmul.msk.f32.gmra.mxu1 %vm324_vm7, %v1388_v20 }
 0x4fc   :  { %838 = vmatpush.msrb.mxu1 %v795_v14  ;;  %v907_v14 = vld [vmem:[#allocation14 + $0x1e0] sm:$0xff] }
 0x4fe   :  { %839 = vmatpush.msrb.mxu1 %v793_v16  ;;  %v905_v16 = vld [vmem:[#allocation14 + $0x1d0] sm:$0xff] }
 0x500   :  { %840 = vmatpush.msrb.mxu1 %v791_v19  ;;  %v903_v19 = vld [vmem:[#allocation14 + $0x1c0] sm:$0xff] }
 0x502   :  { %841 = vmatpush.msrb.mxu1 %v789_v22  ;;  %v900_v22 = vld [vmem:[#allocation14 + $0x1a8] sm:$0xff] }
 0x504   :  { %842 = vmatpush.msrb.mxu1 %v787_v25  ;;  %v898_v25 = vld [vmem:[#allocation14 + $0x198] sm:$0xff] }
 0x506   :  { %843 = vmatpush.msrb.mxu1 %v785_v27  ;;  %v895_v27 = vld [vmem:[#allocation14 + $0x180] sm:$0xff] }
 0x508   :  { %844 = vmatpush.msrb.mxu1 %v783_v29 }
 0x50a   :  { %845 = vmatpush.msrb.mxu1 %v781_v32 }
 0x50c   :  { %846 = vmatpush.msrb.mxu1 %v779_v39  ;;  %v1002_v39 = vld [vmem:[#allocation16 + $0x3] ss:$0 sm:$0xff] }
 0x50e   :  { %847 = vmatpush.msrb.mxu1 %v777_v24 }
 0x510   :  { %848 = vmatpush.msrb.mxu1 %v775_v42 }
 0x512   :  { %849 = vmatpush.msrb.mxu1 %v773_v44 }
 0x570   :  { %v698_v30 = vpop.f32.mrf.mxu1 }
 0x571   :  { %vm704_vm4 = vcmp.ge.f32.partialorder %v698_v30, 0.0  ;;  %v706_v33 = vmul.f32 0.01, %v698_v30 }
 0x573   :  { %v708_v34 = vsel %vm704_vm4, %v698_v30, %v706_v33 }
 0x574   :  { %756 = vmatmul.f32.vlgmr.msrb.gmra.mxu3 %v708_v34 }
 0x578   :  { %v701_v35 = vpop.f32.mrf.mxu1 }
 0x579   :  { %v707_v36 = vmul.f32 0.01, %v701_v35  ;;  %vm705_vm5 = vcmp.ge.f32.partialorder %v701_v35, 0.0 }
 0x57b   :  { %v709_v37 = vsel %vm705_vm5, %v701_v35, %v707_v36  ;;  %v808_v35 = vperm.slane %v805_v4, 1 }
 0x57c   :  { %759 = vmatmul.f32.gmra.mxu3 %v709_v37 }
 0x5f7   :  { %v757_v53 = vpop.f32.mrf.mxu3 }
 0x5f8   :  { %v758_v56 = vadd.f32 %v1001_v50, %v757_v53 }
 0x5fa   :  { %v763_v58 = vadd.f32 %v758_v56, %v716_v55 }
 0x5fc   :  { %v767_v59 = vmul.f32 0.01, %v763_v58  ;;  %vm765_vm9 = vcmp.ge.f32.partialorder %v763_v58, 0.0 }
 0x5fe   :  { %v769_v61 = vsel %vm765_vm9, %v763_v58, %v767_v59 }
 0x5ff   :  { %v760_v62 = vpop.f32.mrf.mxu3  ;;  %827 = vmatmul.f32.vlgmr.msra.gmra.mxu0 %v769_v61  ;;  %850 = vmatmul.f32.vlgmr.msrb.gmra.mxu1 %v769_v61 }
 0x600   :  { %v761_v63 = vadd.f32 %v1001_v50, %v760_v62 }
 0x602   :  { %v764_v0 = vadd.f32 %v761_v63, %v717_v54 }
 0x604   :  { %vm766_vm10 = vcmp.ge.f32.partialorder %v764_v0, 0.0  ;;  %v768_v1 = vmul.f32 0.01, %v764_v0 }
 0x606   :  { %v770_v2 = vsel %vm766_vm10, %v764_v0, %v768_v1 }
 0x607   :  { %830 = vmatmul.f32.gmra.mxu0 %v770_v2  ;;  %853 = vmatmul.f32.gmra.mxu1 %v770_v2 }
 0x67c   :  { %v828_v3 = vpop.f32.mrf.mxu0  ;;  %v851_v34 = vpop.f32.mrf.mxu1 }
 0x67d   :  { %v829_v10 = vadd.f32 %v828_v3, %v807_v6  ;;  %v852_v36 = vadd.f32 %v851_v34, %v808_v35 }
 0x67f   :  { %v888_v37 = vmul.f32 0.01, %v852_v36  ;;  %vm886_vm12 = vcmp.ge.f32.partialorder %v852_v36, 0.0 }
 0x681   :  { %v890_v40 = vsel %vm886_vm12, %v852_v36, %v888_v37 }
 0x682   :  { %v892_v42 = vadd.f32 %v890_v40, %v1393_v5 }
 0x684   :  { %v831_v7 = vpop.f32.mrf.mxu0  ;;  %v854_v38 = vpop.f32.mrf.mxu1 }
 0x685   :  { %v832_v9 = vadd.f32 %v831_v7, %v807_v6  ;;  %v855_v24 = vadd.f32 %v854_v38, %v808_v35 }
 0x687   :  { %871 = vmatpush.msra.mxu2 %v832_v9  ;;  %v889_v44 = vmul.f32 0.01, %v855_v24  ;;  %vm887_vm13 = vcmp.ge.f32.partialorder %v855_v24, 0.0 }
 0x689   :  { %872 = vmatpush.msra.mxu2 %v829_v10  ;;  %v891_v47 = vsel %vm887_vm13, %v855_v24, %v889_v44 }
 0x68a   :  { %979 = vmatmul.msk.f32.vlgmr.msra.gmra.mxu2 %vm324_vm7, %v1384_v17  ;;  %v901_v17 = vld [vmem:[#allocation14 + $0x1b0] sm:$0xff]  ;;  %v893_v50 = vadd.f32 %v891_v47, %v1396_v13 }
 0x68b   :  { %916 = vmatpush.msrb.mxu2 %v910_v11 }
 0x68d   :  { %917 = vmatpush.msrb.mxu2 %v909_v12 }
 0x68f   :  { %918 = vmatpush.msrb.mxu2 %v908_v8 }
 0x691   :  { %919 = vmatpush.msrb.mxu2 %v907_v14 }
 0x692   :  { %980 = vmatmul.msk.f32.gmra.mxu2 %vm324_vm7, %v1388_v20  ;;  %v896_v20 = vld [vmem:[#allocation14 + $0x188] sm:$0xff] }
 0x693   :  { %920 = vmatpush.msrb.mxu2 %v906_v15 }
 0x695   :  { %921 = vmatpush.msrb.mxu2 %v905_v16 }
 0x697   :  { %922 = vmatpush.msrb.mxu2 %v904_v18 }
 0x699   :  { %923 = vmatpush.msrb.mxu2 %v903_v19 }
 0x69b   :  { %924 = vmatpush.msrb.mxu2 %v902_v21 }
 0x69d   :  { %925 = vmatpush.msrb.mxu2 %v901_v17 }
 0x69f   :  { %926 = vmatpush.msrb.mxu2 %v900_v22 }
 0x6a1   :  { %927 = vmatpush.msrb.mxu2 %v899_v23 }
 0x6a3   :  { %928 = vmatpush.msrb.mxu2 %v898_v25 }
 0x6a5   :  { %929 = vmatpush.msrb.mxu2 %v897_v26 }
 0x6a7   :  { %930 = vmatpush.msrb.mxu2 %v896_v20 }
 0x6a9   :  { %931 = vmatpush.msrb.mxu2 %v895_v27 }
 0x70d   :  { %v874_v28 = vpop.f32.mrf.mxu2 }
 0x70e   :  { %vm880_vm7 = vcmp.ge.f32.partialorder %v874_v28, 0.0  ;;  %v882_v29 = vmul.f32 0.01, %v874_v28 }
 0x710   :  { %v884_v30 = vsel %vm880_vm7, %v874_v28, %v882_v29 }
 0x711   :  { %932 = vmatmul.f32.vlgmr.msrb.gmra.mxu2 %v884_v30 }
 0x715   :  { %v877_v31 = vpop.f32.mrf.mxu2 }
 0x716   :  { %v883_v32 = vmul.f32 0.01, %v877_v31  ;;  %vm881_vm11 = vcmp.ge.f32.partialorder %v877_v31, 0.0 }
 0x718   :  { %v885_v33 = vsel %vm881_vm11, %v877_v31, %v883_v32 }
 0x719   :  { %935 = vmatmul.f32.gmra.mxu2 %v885_v33 }
 0x794   :  { %v933_v41 = vpop.f32.mrf.mxu2 }
 0x795   :  { %v934_v43 = vadd.f32 %v1002_v39, %v933_v41 }
 0x797   :  { %v939_v45 = vadd.f32 %v934_v43, %v892_v42 }
 0x799   :  { %vm941_vm14 = vcmp.ge.f32.partialorder %v939_v45, 0.0  ;;  %v943_v46 = vmul.f32 0.01, %v939_v45 }
 0x79b   :  { %v945_v48 = vsel %vm941_vm14, %v939_v45, %v943_v46 }
 0x79c   :  { %v936_v49 = vpop.f32.mrf.mxu2  ;;  %947 = vst [vmem:[#allocation17] sm:$0xff] %v945_v48 }
 0x79d   :  { %v937_v51 = vadd.f32 %v1002_v39, %v936_v49 }
 0x79f   :  { %v940_v52 = vadd.f32 %v937_v51, %v893_v50 }
 0x7a1   :  { %vm942_vm15 = vcmp.ge.f32.partialorder %v940_v52, 0.0  ;;  %v944_v5 = vmul.f32 0.01, %v940_v52 }
 0x7a3   :  { %v946_v53 = vsel %vm942_vm15, %v940_v52, %v944_v5 }
 0x7a4   :  { %948 = vst [vmem:[#allocation17 + $0x8] sm:$0xff] %v946_v53 }
 0x7a5   :  { %961 = dma.vmem_to_hbm [thread:$0]  %s954_s17, 256, %s956_s19, [#allocation4], %s1261_s1, %s1261_s1, %s1262_s26  }
 0x7a6   :  { %1257 = dma.done.wait [#allocation4], 256  }
 0x7a7   :  { %1258 = vsyncadd [#allocation4], 4294967040 }
 0x7a8   :  { %966 = vsyncpa [#allocation3], 1 }
 0x7a9   :  { %967 = vsyncpa [#allocation6], 1 }
 0x7aa   :  { %968 = vsyncpa [#allocation9], 1 }
 0x7ab   :  { %969 = vsyncpa [#allocation12], 1 }
 0x7ac   :  { %970 = vsyncpa [#allocation15], 1 }
 0x7ad   :  { %971 = vsyncpa [#allocation4], 1 }

</bundles_post_ra>
